<compile_context>
chip_gen: v7x
topology: tpu7x:2x2x1
jax: 0.10.0
libtpu: 0.0.40
codegen_flags: <defaults>
</compile_context>

<pallas_src>
import functools
import math

import jax
import jax.numpy as jnp
from jax.experimental import pallas as pl
from jax.experimental.pallas import tpu as pltpu


_ENC_WIDTHS = [64, 32, 16, 8, 4]
_DEC_WIDTHS = [8, 16, 32, 64]
_MID_PAD = 64  # all hidden widths <= 64; middle layers are padded to 64x64


def _layer_dims(input_size):
    widths = [input_size] + _ENC_WIDTHS + _DEC_WIDTHS + [input_size]
    return list(zip(widths[:-1], widths[1:]))  # 10 (in, out) pairs


def _autoencoder_kernel(x_ref, w_first_ref, w_mid_ref, w_last_ref,
                        b_mid_ref, b_last_ref, out_ref):
    """One (TM, D) batch tile through the full 10-layer MLP.

    x_ref:       (TM, D)       bf16
    w_first_ref: (D, 64)       bf16
    w_mid_ref:   (8, 64, 64)   f32  (each middle weight zero-padded to 64x64)
    w_last_ref:  (64, D)       bf16
    b_mid_ref:   (9, 64)       f32  (biases of layers 0..8, zero-padded)
    b_last_ref:  (1, D)        f32
    out_ref:     (TM, D)       f32
    """
    n_mid = w_mid_ref.shape[0]

    # Layer 0: bf16 MXU matmul with f32 accumulation.
    h = jnp.dot(x_ref[...], w_first_ref[...], preferred_element_type=jnp.float32)
    h = jnp.tanh(h + b_mid_ref[0:1, :])                       # (TM, 64) f32

    # Layers 1..8: tiny padded 64x64 matmuls; activations stay f32.
    # Padded weight rows/cols and bias lanes are zero, and tanh(0) == 0,
    # so padded lanes of `h` never contaminate the real ones.
    for i in range(n_mid):
        w = w_mid_ref[i]                                      # (64, 64), static index
        h = jnp.dot(h, w, preferred_element_type=jnp.float32)
        h = jnp.tanh(h + b_mid_ref[i + 1:i + 2, :])

    # Layer 9: bf16 MXU matmul with f32 accumulation, then sigmoid.
    z = jnp.dot(h.astype(jnp.bfloat16), w_last_ref[...],
                preferred_element_type=jnp.float32)
    out_ref[...] = jax.nn.sigmoid(z + b_last_ref[...]).astype(out_ref.dtype)


@functools.partial(jax.jit, static_argnames=("tm",))
def autoencoder_forward(x, packed_params, *, tm=512):
    """x: (B, input_size). packed_params: output of pack_params(). Returns (B, input_size) f32."""
    w_first, w_mid, w_last, b_mid, b_last = packed_params
    batch, d = x.shape

    x = x.astype(jnp.bfloat16)

    # Choose the batch tile and pad so the grid divides evenly.
    if tm >= batch:
        tm = batch                       # single tile: block dim == full dim is allowed
    else:
        tm = max(8, (tm // 8) * 8)       # keep sublane alignment for partial-batch tiles
    padded = pl.cdiv(batch, tm) * tm
    if padded != batch:
        x = jnp.pad(x, ((0, padded - batch), (0, 0)))
    grid = (padded // tm,)

    n_mid, mp, _ = w_mid.shape

    out = pl.pallas_call(
        _autoencoder_kernel,
        out_shape=jax.ShapeDtypeStruct((padded, d), jnp.float32),
        grid=grid,
        in_specs=[
            pl.BlockSpec((tm, d), lambda i: (i, 0)),             # x tile (pipelined)
            pl.BlockSpec((d, mp), lambda i: (0, 0)),             # w_first, VMEM-resident
            pl.BlockSpec((n_mid, mp, mp), lambda i: (0, 0, 0)),  # packed middle weights
            pl.BlockSpec((mp, d), lambda i: (0, 0)),             # w_last, VMEM-resident
            pl.BlockSpec((n_mid + 1, mp), lambda i: (0, 0)),     # packed biases 0..8
            pl.BlockSpec((1, d), lambda i: (0, 0)),              # final bias
        ],
        out_specs=pl.BlockSpec((tm, d), lambda i: (i, 0)),
        compiler_params=pltpu.CompilerParams(
            dimension_semantics=("parallel",),
            vmem_limit_bytes=48 * 1024 * 1024,
        ),
    )(x, w_first, w_mid, w_last, b_mid, b_last)

    if padded != batch:
        out = out[:batch]
    return out


def init_params(key, input_size):
    """Deterministic init mimicking PyTorch Linear default (U[-1/sqrt(fan_in), +])."""
    weights, biases = [], []
    for (fan_in, fan_out) in _layer_dims(input_size):
        key, kw, kb = jax.random.split(key, 3)
        bound = 1.0 / math.sqrt(float(fan_in))
        # stored as (in, out) == PyTorch weight.T
        w = jax.random.uniform(kw, (fan_in, fan_out), jnp.float32, -bound, bound)
        b = jax.random.uniform(kb, (fan_out,), jnp.float32, -bound, bound)
        weights.append(w)
        biases.append(b)
    return weights, biases


def pack_params(weights, biases):
    """Pack per-layer params into the kernel layout (bf16 big weights, padded mids)."""
    w_first = weights[0].astype(jnp.bfloat16)                 # (D, 64)
    w_last = weights[-1].astype(jnp.bfloat16)                 # (64, D)

    w_mid = jnp.zeros((8, _MID_PAD, _MID_PAD), jnp.float32)
    for k, w in enumerate(weights[1:-1]):
        w_mid = w_mid.at[k, : w.shape[0], : w.shape[1]].set(w)

    b_mid = jnp.zeros((9, _MID_PAD), jnp.float32)
    for k, b in enumerate(biases[:-1]):
        b_mid = b_mid.at[k, : b.shape[0]].set(b)

    b_last = biases[-1].reshape(1, -1).astype(jnp.float32)    # (1, D)
    return (w_first, w_mid, w_last, b_mid, b_last)


def reference_forward(x, weights, biases):
    """Pure-JAX reference using the same bf16 I/O precision choices as the kernel."""
    bf = lambda a: a.astype(jnp.bfloat16).astype(jnp.float32)
    h = bf(x)
    n = len(weights)
    for i in range(n):
        w = weights[i].astype(jnp.float32)
        if i == 0 or i == n - 1:
            w = bf(w)                  # big weights are shipped in bf16
        if i == n - 1:
            h = bf(h)                  # kernel casts the last hidden to bf16 for the MXU
        h = h @ w + biases[i][None, :]
        h = jax.nn.sigmoid(h) if i == n - 1 else jnp.tanh(h)
    return h


if __name__ == "__main__":
    input_size = 512      # small instance of Autoencoder(input_size=...)
    batch = 256
    tm = 128              # 2 grid steps -> exercises the batch pipeline

    key = jax.random.PRNGKey(0)
    key, kx = jax.random.split(key)
    x = jax.random.normal(kx, (batch, input_size), jnp.float32)

    weights, biases = init_params(key, input_size)
    packed = pack_params(weights, biases)

    out = autoencoder_forward(x, packed, tm=tm)
    out = jax.block_until_ready(out)

    ref = reference_forward(x, weights, biases)
    assert out.shape == (batch, input_size)
    max_err = float(jnp.max(jnp.abs(out - ref)))
    assert jnp.allclose(out, ref, atol=3e-2, rtol=3e-2), (
        f"mismatch vs JAX reference (max abs err {max_err})")

    print("KERNEL_OK")
</pallas_src>

<mosaic_0001>
module attributes {stable_mosaic.version = 11 : i64} {
  func.func @_autoencoder_kernel(%arg0: i32, %arg1: memref<128x512xbf16, #tpu.memory_space<vmem>>, %arg2: memref<512x64xbf16, #tpu.memory_space<vmem>>, %arg3: memref<8x64x64xf32, #tpu.memory_space<vmem>>, %arg4: memref<64x512xbf16, #tpu.memory_space<vmem>>, %arg5: memref<9x64xf32, #tpu.memory_space<vmem>>, %arg6: memref<1x512xf32, #tpu.memory_space<vmem>>, %arg7: memref<128x512xf32, #tpu.memory_space<vmem>>) attributes {dimension_semantics = [#tpu.dimension_semantics<parallel>], iteration_bounds = array<i64: 2>, scalar_prefetch = 0 : i64, scratch_operands = 0 : i64, tpu.core_type = #tpu.core_type<tc>, window_params = [{transform_indices = @transform_0, window_bounds = array<i64: 128, 512>}, {pipeline_mode = #tpu.pipeline_mode<synchronous>, transform_indices = @transform_1, window_bounds = array<i64: 512, 64>}, {pipeline_mode = #tpu.pipeline_mode<synchronous>, transform_indices = @transform_2, window_bounds = array<i64: 8, 64, 64>}, {pipeline_mode = #tpu.pipeline_mode<synchronous>, transform_indices = @transform_3, window_bounds = array<i64: 64, 512>}, {pipeline_mode = #tpu.pipeline_mode<synchronous>, transform_indices = @transform_4, window_bounds = array<i64: 9, 64>}, {pipeline_mode = #tpu.pipeline_mode<synchronous>, transform_indices = @transform_5, window_bounds = array<i64: 1, 512>}, {transform_indices = @transform_6, window_bounds = array<i64: 128, 512>}]} {
    %c0 = arith.constant 0 : index
    %c0_0 = arith.constant 0 : index
    %0 = vector.load %arg1[%c0, %c0_0] : memref<128x512xbf16, #tpu.memory_space<vmem>>, vector<128x512xbf16>
    %c0_1 = arith.constant 0 : index
    %c0_2 = arith.constant 0 : index
    %1 = vector.load %arg2[%c0_1, %c0_2] : memref<512x64xbf16, #tpu.memory_space<vmem>>, vector<512x64xbf16>
    %cst = arith.constant dense<0.000000e+00> : vector<128x64xf32>
    %2 = tpu.matmul %0, %1, %cst {dimension_numbers = #tpu.dot_dimension_numbers<[1], [0], [0], [1], [0, 0, 1, 1], [], []>} : vector<128x512xbf16>, vector<512x64xbf16>, vector<128x64xf32> -> vector<128x64xf32>
    %c0_3 = arith.constant 0 : index
    %c0_4 = arith.constant 0 : index
    %3 = vector.load %arg5[%c0_3, %c0_4] : memref<9x64xf32, #tpu.memory_space<vmem>>, vector<1x64xf32>
    %4 = vector.broadcast %3 : vector<1x64xf32> to vector<128x64xf32>
    %5 = arith.addf %2, %4 : vector<128x64xf32>
    %6 = math.tanh %5 : vector<128x64xf32>
    %c0_5 = arith.constant 0 : index
    %c0_6 = arith.constant 0 : index
    %c0_7 = arith.constant 0 : index
    %7 = vector.load %arg3[%c0_5, %c0_6, %c0_7] : memref<8x64x64xf32, #tpu.memory_space<vmem>>, vector<1x64x64xf32>
    %8 = vector.shape_cast %7 : vector<1x64x64xf32> to vector<64x64xf32>
    %cst_8 = arith.constant dense<0.000000e+00> : vector<128x64xf32>
    %9 = tpu.matmul %6, %8, %cst_8 {dimension_numbers = #tpu.dot_dimension_numbers<[1], [0], [0], [1], [0, 0, 1, 1], [], []>} : vector<128x64xf32>, vector<64x64xf32>, vector<128x64xf32> -> vector<128x64xf32>
    %c1 = arith.constant 1 : index
    %c0_9 = arith.constant 0 : index
    %10 = vector.load %arg5[%c1, %c0_9] : memref<9x64xf32, #tpu.memory_space<vmem>>, vector<1x64xf32>
    %11 = vector.broadcast %10 : vector<1x64xf32> to vector<128x64xf32>
    %12 = arith.addf %9, %11 : vector<128x64xf32>
    %13 = math.tanh %12 : vector<128x64xf32>
    %c1_10 = arith.constant 1 : index
    %c0_11 = arith.constant 0 : index
    %c0_12 = arith.constant 0 : index
    %14 = vector.load %arg3[%c1_10, %c0_11, %c0_12] : memref<8x64x64xf32, #tpu.memory_space<vmem>>, vector<1x64x64xf32>
    %15 = vector.shape_cast %14 : vector<1x64x64xf32> to vector<64x64xf32>
    %cst_13 = arith.constant dense<0.000000e+00> : vector<128x64xf32>
    %16 = tpu.matmul %13, %15, %cst_13 {dimension_numbers = #tpu.dot_dimension_numbers<[1], [0], [0], [1], [0, 0, 1, 1], [], []>} : vector<128x64xf32>, vector<64x64xf32>, vector<128x64xf32> -> vector<128x64xf32>
    %c2 = arith.constant 2 : index
    %c0_14 = arith.constant 0 : index
    %17 = vector.load %arg5[%c2, %c0_14] : memref<9x64xf32, #tpu.memory_space<vmem>>, vector<1x64xf32>
    %18 = vector.broadcast %17 : vector<1x64xf32> to vector<128x64xf32>
    %19 = arith.addf %16, %18 : vector<128x64xf32>
    %20 = math.tanh %19 : vector<128x64xf32>
    %c2_15 = arith.constant 2 : index
    %c0_16 = arith.constant 0 : index
    %c0_17 = arith.constant 0 : index
    %21 = vector.load %arg3[%c2_15, %c0_16, %c0_17] : memref<8x64x64xf32, #tpu.memory_space<vmem>>, vector<1x64x64xf32>
    %22 = vector.shape_cast %21 : vector<1x64x64xf32> to vector<64x64xf32>
    %cst_18 = arith.constant dense<0.000000e+00> : vector<128x64xf32>
    %23 = tpu.matmul %20, %22, %cst_18 {dimension_numbers = #tpu.dot_dimension_numbers<[1], [0], [0], [1], [0, 0, 1, 1], [], []>} : vector<128x64xf32>, vector<64x64xf32>, vector<128x64xf32> -> vector<128x64xf32>
    %c3 = arith.constant 3 : index
    %c0_19 = arith.constant 0 : index
    %24 = vector.load %arg5[%c3, %c0_19] : memref<9x64xf32, #tpu.memory_space<vmem>>, vector<1x64xf32>
    %25 = vector.broadcast %24 : vector<1x64xf32> to vector<128x64xf32>
    %26 = arith.addf %23, %25 : vector<128x64xf32>
    %27 = math.tanh %26 : vector<128x64xf32>
    %c3_20 = arith.constant 3 : index
    %c0_21 = arith.constant 0 : index
    %c0_22 = arith.constant 0 : index
    %28 = vector.load %arg3[%c3_20, %c0_21, %c0_22] : memref<8x64x64xf32, #tpu.memory_space<vmem>>, vector<1x64x64xf32>
    %29 = vector.shape_cast %28 : vector<1x64x64xf32> to vector<64x64xf32>
    %cst_23 = arith.constant dense<0.000000e+00> : vector<128x64xf32>
    %30 = tpu.matmul %27, %29, %cst_23 {dimension_numbers = #tpu.dot_dimension_numbers<[1], [0], [0], [1], [0, 0, 1, 1], [], []>} : vector<128x64xf32>, vector<64x64xf32>, vector<128x64xf32> -> vector<128x64xf32>
    %c4 = arith.constant 4 : index
    %c0_24 = arith.constant 0 : index
    %31 = vector.load %arg5[%c4, %c0_24] : memref<9x64xf32, #tpu.memory_space<vmem>>, vector<1x64xf32>
    %32 = vector.broadcast %31 : vector<1x64xf32> to vector<128x64xf32>
    %33 = arith.addf %30, %32 : vector<128x64xf32>
    %34 = math.tanh %33 : vector<128x64xf32>
    %c4_25 = arith.constant 4 : index
    %c0_26 = arith.constant 0 : index
    %c0_27 = arith.constant 0 : index
    %35 = vector.load %arg3[%c4_25, %c0_26, %c0_27] : memref<8x64x64xf32, #tpu.memory_space<vmem>>, vector<1x64x64xf32>
    %36 = vector.shape_cast %35 : vector<1x64x64xf32> to vector<64x64xf32>
    %cst_28 = arith.constant dense<0.000000e+00> : vector<128x64xf32>
    %37 = tpu.matmul %34, %36, %cst_28 {dimension_numbers = #tpu.dot_dimension_numbers<[1], [0], [0], [1], [0, 0, 1, 1], [], []>} : vector<128x64xf32>, vector<64x64xf32>, vector<128x64xf32> -> vector<128x64xf32>
    %c5 = arith.constant 5 : index
    %c0_29 = arith.constant 0 : index
    %38 = vector.load %arg5[%c5, %c0_29] : memref<9x64xf32, #tpu.memory_space<vmem>>, vector<1x64xf32>
    %39 = vector.broadcast %38 : vector<1x64xf32> to vector<128x64xf32>
    %40 = arith.addf %37, %39 : vector<128x64xf32>
    %41 = math.tanh %40 : vector<128x64xf32>
    %c5_30 = arith.constant 5 : index
    %c0_31 = arith.constant 0 : index
    %c0_32 = arith.constant 0 : index
    %42 = vector.load %arg3[%c5_30, %c0_31, %c0_32] : memref<8x64x64xf32, #tpu.memory_space<vmem>>, vector<1x64x64xf32>
    %43 = vector.shape_cast %42 : vector<1x64x64xf32> to vector<64x64xf32>
    %cst_33 = arith.constant dense<0.000000e+00> : vector<128x64xf32>
    %44 = tpu.matmul %41, %43, %cst_33 {dimension_numbers = #tpu.dot_dimension_numbers<[1], [0], [0], [1], [0, 0, 1, 1], [], []>} : vector<128x64xf32>, vector<64x64xf32>, vector<128x64xf32> -> vector<128x64xf32>
    %c6 = arith.constant 6 : index
    %c0_34 = arith.constant 0 : index
    %45 = vector.load %arg5[%c6, %c0_34] : memref<9x64xf32, #tpu.memory_space<vmem>>, vector<1x64xf32>
    %46 = vector.broadcast %45 : vector<1x64xf32> to vector<128x64xf32>
    %47 = arith.addf %44, %46 : vector<128x64xf32>
    %48 = math.tanh %47 : vector<128x64xf32>
    %c6_35 = arith.constant 6 : index
    %c0_36 = arith.constant 0 : index
    %c0_37 = arith.constant 0 : index
    %49 = vector.load %arg3[%c6_35, %c0_36, %c0_37] : memref<8x64x64xf32, #tpu.memory_space<vmem>>, vector<1x64x64xf32>
    %50 = vector.shape_cast %49 : vector<1x64x64xf32> to vector<64x64xf32>
    %cst_38 = arith.constant dense<0.000000e+00> : vector<128x64xf32>
    %51 = tpu.matmul %48, %50, %cst_38 {dimension_numbers = #tpu.dot_dimension_numbers<[1], [0], [0], [1], [0, 0, 1, 1], [], []>} : vector<128x64xf32>, vector<64x64xf32>, vector<128x64xf32> -> vector<128x64xf32>
    %c7 = arith.constant 7 : index
    %c0_39 = arith.constant 0 : index
    %52 = vector.load %arg5[%c7, %c0_39] : memref<9x64xf32, #tpu.memory_space<vmem>>, vector<1x64xf32>
    %53 = vector.broadcast %52 : vector<1x64xf32> to vector<128x64xf32>
    %54 = arith.addf %51, %53 : vector<128x64xf32>
    %55 = math.tanh %54 : vector<128x64xf32>
    %c7_40 = arith.constant 7 : index
    %c0_41 = arith.constant 0 : index
    %c0_42 = arith.constant 0 : index
    %56 = vector.load %arg3[%c7_40, %c0_41, %c0_42] : memref<8x64x64xf32, #tpu.memory_space<vmem>>, vector<1x64x64xf32>
    %57 = vector.shape_cast %56 : vector<1x64x64xf32> to vector<64x64xf32>
    %cst_43 = arith.constant dense<0.000000e+00> : vector<128x64xf32>
    %58 = tpu.matmul %55, %57, %cst_43 {dimension_numbers = #tpu.dot_dimension_numbers<[1], [0], [0], [1], [0, 0, 1, 1], [], []>} : vector<128x64xf32>, vector<64x64xf32>, vector<128x64xf32> -> vector<128x64xf32>
    %c8 = arith.constant 8 : index
    %c0_44 = arith.constant 0 : index
    %59 = vector.load %arg5[%c8, %c0_44] : memref<9x64xf32, #tpu.memory_space<vmem>>, vector<1x64xf32>
    %60 = vector.broadcast %59 : vector<1x64xf32> to vector<128x64xf32>
    %61 = arith.addf %58, %60 : vector<128x64xf32>
    %62 = math.tanh %61 : vector<128x64xf32>
    %63 = arith.truncf %62 : vector<128x64xf32> to vector<128x64xbf16>
    %c0_45 = arith.constant 0 : index
    %c0_46 = arith.constant 0 : index
    %64 = vector.load %arg4[%c0_45, %c0_46] : memref<64x512xbf16, #tpu.memory_space<vmem>>, vector<64x512xbf16>
    %cst_47 = arith.constant dense<0.000000e+00> : vector<128x512xf32>
    %65 = tpu.matmul %63, %64, %cst_47 {dimension_numbers = #tpu.dot_dimension_numbers<[1], [0], [0], [1], [0, 0, 1, 1], [], []>} : vector<128x64xbf16>, vector<64x512xbf16>, vector<128x512xf32> -> vector<128x512xf32>
    %c0_48 = arith.constant 0 : index
    %c0_49 = arith.constant 0 : index
    %66 = vector.load %arg6[%c0_48, %c0_49] : memref<1x512xf32, #tpu.memory_space<vmem>>, vector<1x512xf32>
    %67 = vector.broadcast %66 : vector<1x512xf32> to vector<128x512xf32>
    %68 = arith.addf %65, %67 : vector<128x512xf32>
    %69 = arith.negf %68 : vector<128x512xf32>
    %70 = math.exp %69 : vector<128x512xf32>
    %cst_50 = arith.constant 1.000000e+00 : f32
    %71 = vector.broadcast %cst_50 : f32 to vector<128x512xf32>
    %72 = arith.addf %71, %70 : vector<128x512xf32>
    %73 = arith.divf %71, %72 : vector<128x512xf32>
    %c0_51 = arith.constant 0 : index
    %c0_52 = arith.constant 0 : index
    %74 = vector.load %arg7[%c0_51, %c0_52] : memref<128x512xf32, #tpu.memory_space<vmem>>, vector<128x512xf32>
    tpu.vector_store %arg7[%c0_51, %c0_52], %73 {strides = array<i32>} : memref<128x512xf32, #tpu.memory_space<vmem>>, vector<128x512xf32>,
    return
  }
  func.func @transform_0(%arg0: i32) -> (i32, i32) {
    %c0_i32 = arith.constant 0 : i32
    %c0_i32_0 = arith.constant 0 : i32
    return %arg0, %c0_i32 : i32, i32
  }
  func.func @transform_1(%arg0: i32) -> (i32, i32) {
    %c0_i32 = arith.constant 0 : i32
    %c0_i32_0 = arith.constant 0 : i32
    %c0_i32_1 = arith.constant 0 : i32
    return %c0_i32, %c0_i32_0 : i32, i32
  }
  func.func @transform_2(%arg0: i32) -> (i32, i32, i32) {
    %c0_i32 = arith.constant 0 : i32
    %c0_i32_0 = arith.constant 0 : i32
    %c0_i32_1 = arith.constant 0 : i32
    %c0_i32_2 = arith.constant 0 : i32
    return %c0_i32, %c0_i32_0, %c0_i32_1 : i32, i32, i32
  }
  func.func @transform_3(%arg0: i32) -> (i32, i32) {
    %c0_i32 = arith.constant 0 : i32
    %c0_i32_0 = arith.constant 0 : i32
    %c0_i32_1 = arith.constant 0 : i32
    return %c0_i32, %c0_i32_0 : i32, i32
  }
  func.func @transform_4(%arg0: i32) -> (i32, i32) {
    %c0_i32 = arith.constant 0 : i32
    %c0_i32_0 = arith.constant 0 : i32
    %c0_i32_1 = arith.constant 0 : i32
    return %c0_i32, %c0_i32_0 : i32, i32
  }
  func.func @transform_5(%arg0: i32) -> (i32, i32) {
    %c0_i32 = arith.constant 0 : i32
    %c0_i32_0 = arith.constant 0 : i32
    %c0_i32_1 = arith.constant 0 : i32
    return %c0_i32, %c0_i32_0 : i32, i32
  }
  func.func @transform_6(%arg0: i32) -> (i32, i32) {
    %c0_i32 = arith.constant 0 : i32
    %c0_i32_0 = arith.constant 0 : i32
    return %arg0, %c0_i32 : i32, i32
  }
}

</mosaic_0001>

<bundles_post_ra>
// kernel: autoencoder_forward.1
= control target key start
LH: loop header
LB: loop body
LE: loop exit
PB: predicated region body
PF: predicated region fallthrough
CT: control target
= control target key end

     0   :  { %11 = vsyncpa [#allocation3], 0  ;;  %s6632_s0 = inlined_call_operand.vmem [shape: bf16[256,512], index: 0, kind: input, shape index: {}]   ;;  %s6633_s1 = inlined_call_operand.vmem [shape: bf16[512,64], index: 1, kind: input, shape index: {}]   ;;  %s6634_s2 = inlined_call_operand.vmem [shape: f32[8,64,64], index: 2, kind: input, shape index: {}]   ;;  %s6635_s3 = inlined_call_operand.vmem [shape: bf16[64,512], index: 3, kind: input, shape index: {}]   ;;  %s6636_s4 = inlined_call_operand.vmem [shape: f32[9,64], index: 4, kind: input, shape index: {}]   ;;  %s6637_s5 = inlined_call_operand.vmem [shape: f32[1,512], index: 5, kind: input, shape index: {}]   ;;  %s6638_s6 = inlined_call_operand.hbm [shape: f32[256,512], index: 6, kind: output, shape index: {}]  }
   0x1   :  { %13 = vsyncpa [#allocation3 + $0x1], 0  ;;  %s5536_s21 = smov 0   ;;  %s5538_s22 = smov 0  }
   0x2   :  { %s5540_s23 = smov 0   ;;  %s5542_s24 = smov 0  }
   0x3 LB: > { %s5557_s25 = sadd.s32 4294967295, %s5495_s24   ;;  %s3605_s26 = sadd.s32 4294967294, %s5495_s24   ;;  %s5495_s24 = sphi %s5542_s24, %s6644_s24   ;;  %s5491_s23 = sphi %s5540_s23, %s6643_s23   ;;  %s5487_s22 = sphi %s5538_s22, %s6642_s22   ;;  %s5483_s21 = sphi %s5536_s21, %s6641_s21  }
   0x4   : > { %s5561_s27 = sadd.s32 1, %s5495_s24   ;;  %s157_s28 = sadd.s32 1, %s5491_s23 }
   0x5   : > { %s154_s29 = ssub.s32 %s5495_s24, %s5561_s27  ;;  %p167_p0 = scmp.ne.s32.totalorder %s5491_s23, %s5487_s22 }
   0x6   : > { %p155_p1 = scmp.eq.s32.totalorder %s154_s29, 0  ;;  %p168_p2 = scmp.eq.s32.totalorder %s5557_s25, 1 }
   0x7   : > { %p173_p3 = scmp.ne.s32.totalorder %s5487_s22, %s5483_s21  ;;  %p174_p4 = scmp.eq.s32.totalorder %s3605_s26, 1 }
   0x8   : > { %s5572_s30 = scalar_select %p155_p1, %s5491_s23, %s157_s28  }
   0x9   : > { %p5574_p5 = por %p168_p2, %p167_p0  ;;  %p5578_p6 = por %p174_p4, %p173_p3 }
   0xa   : > { %p3608_p7 = scmp.ge.s32.totalorder %s5495_s24, 1  ;;  %p217_p8 = scmp.lt.s32.totalorder %s5495_s24, 3 }
   0xc   : > { %p218_p9 = pnand %p3608_p7, %p217_p8 }
   0xd   : > { %v4785_v0 = vld [vmem:[%s6633_s1 + $0x40] sm:$0xff] (!%p218_p9)   ;;  %v4789_v4 = vld [vmem:[%s6633_s1 + $0x48] sm:$0xff] (!%p218_p9)   ;;  %v4793_v8 = vld [vmem:[%s6633_s1 + $0x50] sm:$0xff] (!%p218_p9)   ;;  %s3610_s11 = sshll.u32 (!%p218_p9), %s5557_s25, 4  ;;  %vm933_vm0 = vcmask (!%p218_p9), 523264   ;;  %s3974_s29 = sshll.u32 (!%p218_p9), %s5557_s25, 13 }
   0xe   : > { %221 = sbr.rel (%p218_p9) target bundleno = 2470 (0x9a6), region = 44  ;;  %v4786_v1 = vld [vmem:[%s6633_s1 + $0xc0] sm:$0xff] (!%p218_p9)   ;;  %3975 = vmatprep.subr.bf16.mxu0 (!%p218_p9), %v4785_v0  ;;  %v4790_v5 = vld [vmem:[%s6633_s1 + $0xc8] sm:$0xff] (!%p218_p9)   ;;  %v4794_v9 = vld [vmem:[%s6633_s1 + $0xd0] sm:$0xff] (!%p218_p9)   ;;  %p249_p10 = scmp.lt.s32.totalorder (!%p218_p9), %s3610_s11, 31 }
   0xf   : > { %v4787_v2 = vld [vmem:[%s6633_s1] sm:$0xff] (!%p218_p9)   ;;  %4039 = vmatprep.subr.bf16.mxu1 (!%p218_p9), %v4786_v1  ;;  %v4791_v6 = vld [vmem:[%s6633_s1 + $0x8] sm:$0xff] (!%p218_p9)   ;;  %v4795_v10 = vld [vmem:[%s6633_s1 + $0x10] sm:$0xff] (!%p218_p9)   ;;  %s6582_s12 = scalar_lea.hbm (!%p218_p9), %s6638_s6, %s3974_s29  ;;  %s5498_s14 = smov (!%p218_p9), [#allocation2]  }
  0x10   : > { %v4788_v3 = vld [vmem:[%s6633_s1 + $0x80] sm:$0xff] (!%p218_p9)   ;;  %3976 = vmatpush3.bf16.msra.mxu0 (!%p218_p9), %v4787_v2  ;;  %v4792_v7 = vld [vmem:[%s6633_s1 + $0x88] sm:$0xff] (!%p218_p9)   ;;  %v4796_v11 = vld [vmem:[%s6633_s1 + $0x90] sm:$0xff] (!%p218_p9)  }
  0x11   : > { %4040 = vmatpush3.bf16.msra.mxu1 (!%p218_p9), %v4788_v3  ;;  %3977 = vmatprep.subr.bf16.mxu0 (!%p218_p9), %v4789_v4  ;;  %v4797_v12 = vld [vmem:[%s6633_s1 + $0x58] sm:$0xff] (!%p218_p9)   ;;  %v4801_v16 = vld [vmem:[%s6633_s1 + $0x60] sm:$0xff] (!%p218_p9)   ;;  %v4805_v20 = vld [vmem:[%s6633_s1 + $0x68] sm:$0xff] (!%p218_p9)  }
  0x12   : > { %4041 = vmatprep.subr.bf16.mxu1 (!%p218_p9), %v4790_v5  ;;  %v4798_v13 = vld [vmem:[%s6633_s1 + $0xd8] sm:$0xff] (!%p218_p9)   ;;  %v4802_v17 = vld [vmem:[%s6633_s1 + $0xe0] sm:$0xff] (!%p218_p9)   ;;  %v4806_v21 = vld [vmem:[%s6633_s1 + $0xe8] sm:$0xff] (!%p218_p9)  }
  0x13   : > { %v4799_v14 = vld [vmem:[%s6633_s1 + $0x18] sm:$0xff] (!%p218_p9)   ;;  %v4803_v18 = vld [vmem:[%s6633_s1 + $0x20] sm:$0xff] (!%p218_p9)   ;;  %v4807_v22 = vld [vmem:[%s6633_s1 + $0x28] sm:$0xff] (!%p218_p9)  }
  0x14   : > { %3978 = vmatpush3.bf16.msra.mxu0 (!%p218_p9), %v4791_v6  ;;  %v4800_v15 = vld [vmem:[%s6633_s1 + $0x98] sm:$0xff] (!%p218_p9)   ;;  %v4804_v19 = vld [vmem:[%s6633_s1 + $0xa0] sm:$0xff] (!%p218_p9)   ;;  %v4808_v23 = vld [vmem:[%s6633_s1 + $0xa8] sm:$0xff] (!%p218_p9)  }
  0x15   : > { %4042 = vmatpush3.bf16.msra.mxu1 %v4792_v7  ;;  %3979 = vmatprep.subr.bf16.mxu0 %v4793_v8  ;;  %s6646_s11 = smov (!%p249_p10, %s3610_s11), 31  ;;  %v4809_v24 = vld [vmem:[%s6633_s1 + $0x70] sm:$0xff]   ;;  %v4813_v28 = vld [vmem:[%s6633_s1 + $0x78] sm:$0xff]   ;;  %v920_v46 = vld [vmem:[%s6634_s2] sm:$0xff] }
  0x16   : > { %4043 = vmatprep.subr.bf16.mxu1 %v4794_v9  ;;  %v4810_v25 = vld [vmem:[%s6633_s1 + $0xf0] sm:$0xff]   ;;  %s3972_s20 = sshll.u32 %s6646_s11, 4  ;;  %v4814_v29 = vld [vmem:[%s6633_s1 + $0xf8] sm:$0xff]   ;;  %v921_v47 = vld [vmem:[%s6634_s2 + $0x8] sm:$0xff]  ;;  %s5437_s11 = sshll.u32 %s5498_s14, 4  ;;  %s5438_s11 = int_to_ptr.vmem [resolvable:$false] %s5437_s11 }
  0x17   : > { %v4811_v26 = vld [vmem:[%s6633_s1 + $0x30] sm:$0xff]   ;;  %s5678_s15 = scalar_lea.vmem %s6632_s0, %s3972_s20  ;;  %v4815_v30 = vld [vmem:[%s6633_s1 + $0x38] sm:$0xff]   ;;  %v4615_v49 = vpack.c.bf16 %v921_v47, %v920_v46  ;;  %v924_v52 = vld [vmem:[%s6634_s2 + $0x20] sm:$0xff]  ;;  %s245_s20 = sand.u32 1, %s5487_s22  }
  0x18   : > { %3980 = vmatpush3.bf16.msra.mxu0 %v4795_v10  ;;  %v4812_v27 = vld [vmem:[%s6633_s1 + $0xb0] sm:$0xff]   ;;  %v4816_v31 = vld [vmem:[%s6633_s1 + $0xb8] sm:$0xff]   ;;  %v925_v56 = vld [vmem:[%s6634_s2 + $0x28] sm:$0xff]  ;;  %s6340_s26 = sshll.u32 %s245_s20, 9  ;;  %s6591_s25 = scalar_lea.sflag [#allocation3], %s245_s20 }
  0x19   : > { %4044 = vmatpush3.bf16.msra.mxu1 %v4796_v11  ;;  %3981 = vmatprep.subr.bf16.mxu0 %v4797_v12  ;;  %v4817_v32 = vld [vmem:[%s5678_s15] ss:$16 sps:$4 sm:$0xff]   ;;  %v4819_v33 = vld [vmem:[%s5678_s15 + $0x4] ss:$16 sps:$4 sm:$0xff]   ;;  %v4820_v34 = vld [vmem:[%s5678_s15 + $0x8] ss:$16 sps:$4 sm:$0xff]   ;;  %v4623_v58 = vpack.c.bf16 %v925_v56, %v924_v52 }
  0x1a   : > { %4045 = vmatprep.subr.bf16.mxu1 %v4798_v13  ;;  %v4822_v35 = vld [vmem:[%s5678_s15 + $0xc] ss:$16 sps:$4 sm:$0xff]   ;;  %742 = vmatprep.mubr.bf16.mxu0 %v4819_v33  ;;  %v4823_v36 = vld [vmem:[%s5678_s15 + $0x24] ss:$16 sps:$4 sm:$0xff]   ;;  %v4827_v38 = vld [vmem:[%s5678_s15 + $0x20] ss:$16 sps:$4 sm:$0xff]  }
  0x1b   : > { %839 = vmatprep.mubr.bf16.mxu1 %v4822_v35  ;;  %v4825_v37 = vld [vmem:[%s5678_s15 + $0x2c] ss:$16 sps:$4 sm:$0xff]   ;;  %v4828_v39 = vld [vmem:[%s5678_s15 + $0x28] ss:$16 sps:$4 sm:$0xff]   ;;  %v4829_v40 = vld [vmem:[%s5678_s15 + $0x44] ss:$16 sps:$4 sm:$0xff]  }
  0x1c   : > { %3982 = vmatpush3.bf16.msra.mxu0 %v4799_v14  ;;  %v4831_v41 = vld [vmem:[%s5678_s15 + $0x4c] ss:$16 sps:$4 sm:$0xff]   ;;  %v4833_v42 = vld [vmem:[%s5678_s15 + $0x40] ss:$16 sps:$4 sm:$0xff]   ;;  %v4834_v43 = vld [vmem:[%s5678_s15 + $0x48] ss:$16 sps:$4 sm:$0xff]  }
  0x1d   : > { %4046 = vmatpush3.bf16.msra.mxu1 %v4800_v15  ;;  %3983 = vmatprep.subr.bf16.mxu0 %v4801_v16  ;;  %v4835_v44 = vld [vmem:[%s5678_s15 + $0x64] ss:$16 sps:$4 sm:$0xff]   ;;  %v4837_v45 = vld [vmem:[%s5678_s15 + $0x6c] ss:$16 sps:$4 sm:$0xff]   ;;  %v4839_v48 = vld [vmem:[%s5678_s15 + $0x60] ss:$16 sps:$4 sm:$0xff]  }
  0x1e   : > { %4047 = vmatprep.subr.bf16.mxu1 %v4802_v17  ;;  %v922_v50 = vld [vmem:[%s6634_s2 + $0x10] sm:$0xff]  ;;  %v923_v51 = vld [vmem:[%s6634_s2 + $0x18] sm:$0xff]  ;;  %v3695_v12 = vld [vmem:[%s6634_s2 + $0x40] sm:$0xff]  ;;  %s6361_s28 = scalar_lea.vmem [#allocation2], %s6340_s26  ;;  %s5439_s16 = scalar_lea.vmem %s5438_s11, 16384 }
  0x1f   : > { %v4840_v53 = vld [vmem:[%s5678_s15 + $0x68] ss:$16 sps:$4 sm:$0xff]   ;;  %v4841_v54 = vld [vmem:[%s5678_s15 + $0x84] ss:$16 sps:$4 sm:$0xff]   ;;  %v4619_v55 = vpack.c.bf16 %v923_v51, %v922_v50  ;;  %v4843_v57 = vld [vmem:[%s5678_s15 + $0x8c] ss:$16 sps:$4 sm:$0xff]  }
  0x20   : > { %3984 = vmatpush3.bf16.msra.mxu0 %v4803_v18  ;;  %v4845_v59 = vld [vmem:[%s5678_s15 + $0x80] ss:$16 sps:$4 sm:$0xff]   ;;  %v4846_v60 = vld [vmem:[%s5678_s15 + $0x88] ss:$16 sps:$4 sm:$0xff]   ;;  %v4847_v61 = vld [vmem:[%s5678_s15 + $0xa4] ss:$16 sps:$4 sm:$0xff]  }
  0x21   : > { %4048 = vmatpush3.bf16.msra.mxu1 %v4804_v19  ;;  %3985 = vmatprep.subr.bf16.mxu0 %v4805_v20  ;;  %v4849_v62 = vld [vmem:[%s5678_s15 + $0xac] ss:$16 sps:$4 sm:$0xff]   ;;  %v4851_v63 = vld [vmem:[%s5678_s15 + $0xa0] ss:$16 sps:$4 sm:$0xff]   ;;  %v4852_v0 = vld [vmem:[%s5678_s15 + $0xa8] ss:$16 sps:$4 sm:$0xff]  }
  0x22   : > { %4049 = vmatprep.subr.bf16.mxu1 %v4806_v21  ;;  %v4853_v1 = vld [vmem:[%s5678_s15 + $0xc4] ss:$16 sps:$4 sm:$0xff]   ;;  %v4855_v2 = vld [vmem:[%s5678_s15 + $0xcc] ss:$16 sps:$4 sm:$0xff]   ;;  %v4857_v3 = vld [vmem:[%s5678_s15 + $0xc0] ss:$16 sps:$4 sm:$0xff]  }
  0x23   : > { %v4858_v4 = vld [vmem:[%s5678_s15 + $0xc8] ss:$16 sps:$4 sm:$0xff]   ;;  %v4859_v5 = vld [vmem:[%s5678_s15 + $0xe4] ss:$16 sps:$4 sm:$0xff]   ;;  %v4861_v6 = vld [vmem:[%s5678_s15 + $0xec] ss:$16 sps:$4 sm:$0xff]  }
  0x24   : > { %3986 = vmatpush3.bf16.msra.mxu0 %v4807_v22  ;;  %v4863_v7 = vld [vmem:[%s5678_s15 + $0xe0] ss:$16 sps:$4 sm:$0xff]   ;;  %v4864_v8 = vld [vmem:[%s5678_s15 + $0xe8] ss:$16 sps:$4 sm:$0xff]   ;;  %s3543_s9 = sshll.u32 %s6361_s28, 4  ;;  %s6584_s9 = int_to_ptr.vmem [resolvable:$true] %s3543_s9 }
  0x25   : > { %4050 = vmatpush3.bf16.msra.mxu1 %v4808_v23  ;;  %3987 = vmatprep.subr.bf16.mxu0 %v4809_v24  ;;  %v926_v9 = vld [vmem:[%s6634_s2 + $0x30] sm:$0xff]  ;;  %v927_v10 = vld [vmem:[%s6634_s2 + $0x38] sm:$0xff]  ;;  %v3696_v13 = vld [vmem:[%s6634_s2 + $0x48] sm:$0xff]  ;;  %s5433_s13 = scalar_lea.vmem %s6584_s9, 8192  ;;  %p5440_p0 = scmp.lt.s32.totalorder %s6584_s9, %s5438_s11 }
  0x26   : > { %4051 = vmatprep.subr.bf16.mxu1 %v4810_v25  ;;  %v4627_v11 = vpack.c.bf16 %v927_v10, %v926_v9  ;;  %v3697_v14 = vld [vmem:[%s6634_s2 + $0x50] sm:$0xff]  ;;  %v4631_v15 = vpack.c.bf16 %v3696_v13, %v3695_v12  ;;  %v3698_v16 = vld [vmem:[%s6634_s2 + $0x58] sm:$0xff]  ;;  %v3699_v18 = vld [vmem:[%s6634_s2 + $0x60] sm:$0xff]  ;;  %p5434_p11 = scmp.ne.s32.totalorder %s6584_s9, %s5433_s13  ;;  %p5441_p1 = scmp.lt.s32.totalorder %s5439_s16, %s5433_s13 }
  0x27   : > { %v4635_v17 = vpack.c.bf16 %v3698_v16, %v3697_v14  ;;  %v3700_v19 = vld [vmem:[%s6634_s2 + $0x68] sm:$0xff]  ;;  %v3701_v21 = vld [vmem:[%s6634_s2 + $0x70] sm:$0xff]  ;;  %v3702_v22 = vld [vmem:[%s6634_s2 + $0x78] sm:$0xff] }
  0x28   : > { %3988 = vmatpush3.bf16.msra.mxu0 %v4811_v26  ;;  %v4639_v20 = vpack.c.bf16 %v3700_v19, %v3699_v18  ;;  %v4643_v23 = vpack.c.bf16 %v3702_v22, %v3701_v21  ;;  %v5769_v26 = vld [vmem:[%s6636_s4] ss:$0 sm:$0xff]  ;;  %p5435_p12 = pnand %p5434_p11, %p5574_p5  ;;  %p5442_p2 = por %p5441_p1, %p5440_p0 }
  0x29   : > { %4052 = vmatpush3.bf16.msra.mxu1 %v4812_v27  ;;  %3989 = vmatprep.subr.bf16.mxu0 %v4813_v28 }
  0x2a   : > { %4053 = vmatprep.subr.bf16.mxu1 %v4814_v29  ;;  %p5436_p13 = pneg %p5435_p12 }
  0x2c   : > { %3990 = vmatpush3.bf16.msra.mxu0 %v4815_v30  ;;  %p5443_p3 = pnand %p5442_p2, %p5436_p13 }
  0x2d   : > { %4054 = vmatpush3.bf16.msra.mxu1 %v4816_v31  ;;  %4616 = vmatprep.subr.bf16.mxu0 %v4615_v49 }
  0x2e   : > { %4632 = vmatprep.subr.bf16.mxu1 %v4631_v15 }
  0x2f   : > { %743 = vmatmul.mubr.bf16.vlgmr.msra.gmra.mrb[0].mxu0 %v4817_v32 }
  0x30   : > { %840 = vmatmul.mubr.bf16.vlgmr.msra.gmra.mrb[0].mxu1 %v4820_v34  ;;  %750 = vmatprep.mubr.bf16.mxu0 %v4823_v36 }
  0x31   : > { %847 = vmatprep.mubr.bf16.mxu1 %v4825_v37  ;;  %4618 = vmatpush3.bf16.msra.mxu0 %v4615_v49 }
  0x32   : > { %4620 = vmatprep.subr.bf16.mxu0 %v4619_v55  ;;  %4634 = vmatpush3.bf16.msra.mxu1 %v4631_v15 }
  0x33   : > { %4636 = vmatprep.subr.bf16.mxu1 %v4635_v17 }
  0x35   : > { %4622 = vmatpush3.bf16.msra.mxu0 %v4619_v55 }
  0x36   : > { %4624 = vmatprep.subr.bf16.mxu0 %v4623_v58  ;;  %4638 = vmatpush3.bf16.msra.mxu1 %v4635_v17 }
  0x37   : > { %751 = vmatmul.mubr.bf16.gmra.mrb[4].mxu0 %v4827_v38  ;;  %4640 = vmatprep.subr.bf16.mxu1 %v4639_v20 }
  0x38   : > { %848 = vmatmul.mubr.bf16.gmra.mrb[4].mxu1 %v4828_v39  ;;  %758 = vmatprep.mubr.bf16.mxu0 %v4829_v40 }
  0x39   : > { %855 = vmatprep.mubr.bf16.mxu1 %v4831_v41  ;;  %4626 = vmatpush3.bf16.msra.mxu0 %v4623_v58 }
  0x3a   : > { %4628 = vmatprep.subr.bf16.mxu0 %v4627_v11  ;;  %4642 = vmatpush3.bf16.msra.mxu1 %v4639_v20 }
  0x3b   : > { %4644 = vmatprep.subr.bf16.mxu1 %v4643_v23 }
  0x3d   : > { %4630 = vmatpush3.bf16.msra.mxu0 %v4627_v11 }
  0x3e   : > { %4646 = vmatpush3.bf16.msra.mxu1 %v4643_v23 }
  0x3f   : > { %759 = vmatmul.mubr.bf16.gmra.mrb[8].mxu0 %v4833_v42 }
  0x40   : > { %856 = vmatmul.mubr.bf16.gmra.mrb[8].mxu1 %v4834_v43  ;;  %766 = vmatprep.mubr.bf16.mxu0 %v4835_v44 }
  0x41   : > { %863 = vmatprep.mubr.bf16.mxu1 %v4837_v45 }
  0x47   : > { %767 = vmatmul.mubr.bf16.gmra.mrb[12].mxu0 %v4839_v48 }
  0x48   : > { %864 = vmatmul.mubr.bf16.gmra.mrb[12].mxu1 %v4840_v53  ;;  %774 = vmatprep.mubr.bf16.mxu0 %v4841_v54 }
  0x49   : > { %871 = vmatprep.mubr.bf16.mxu1 %v4843_v57 }
  0x4f   : > { %775 = vmatmul.mubr.bf16.gmra.mrb[16].mxu0 %v4845_v59 }
  0x50   : > { %872 = vmatmul.mubr.bf16.gmra.mrb[16].mxu1 %v4846_v60  ;;  %782 = vmatprep.mubr.bf16.mxu0 %v4847_v61 }
  0x51   : > { %879 = vmatprep.mubr.bf16.mxu1 %v4849_v62 }
  0x57   : > { %783 = vmatmul.mubr.bf16.gmra.mrb[20].mxu0 %v4851_v63 }
  0x58   : > { %880 = vmatmul.mubr.bf16.gmra.mrb[20].mxu1 %v4852_v0  ;;  %790 = vmatprep.mubr.bf16.mxu0 %v4853_v1 }
  0x59   : > { %887 = vmatprep.mubr.bf16.mxu1 %v4855_v2 }
  0x5f   : > { %791 = vmatmul.mubr.bf16.gmra.mrb[24].mxu0 %v4857_v3 }
  0x60   : > { %888 = vmatmul.mubr.bf16.gmra.mrb[24].mxu1 %v4858_v4  ;;  %798 = vmatprep.mubr.bf16.mxu0 %v4859_v5 }
  0x61   : > { %895 = vmatprep.mubr.bf16.mxu1 %v4861_v6 }
  0x67   : > { %799 = vmatmul.mubr.bf16.gmra.mrb[28].mxu0 %v4863_v7 }
  0x68   : > { %896 = vmatmul.mubr.bf16.gmra.mrb[28].mxu1 %v4864_v8 }
 0x102   : > { %v3991_v24 = vpop.f32.mrb[0].mxu0 }
 0x103   : > { %v4055_v25 = vpop.f32.mrb[0].mxu1  ;;  %v3992_v27 = vpop.f32.mrb[1].mxu0 }
 0x104   : > { %v3993_v28 = vadd.f32 %v3992_v27, %v3991_v24  ;;  %v4056_v29 = vpop.f32.mrb[1].mxu1  ;;  %v3994_v30 = vpop.f32.mrb[2].mxu0 }
 0x105   : > { %v4057_v31 = vadd.f32 %v4056_v29, %v4055_v25  ;;  %v4058_v32 = vpop.f32.mrb[2].mxu1  ;;  %v3995_v33 = vpop.f32.mrb[3].mxu0 }
 0x106   : > { %v745_v34 = vadd.f32 %v3993_v28, %v5769_v26  ;;  %v3996_v35 = vadd.f32 %v3995_v33, %v3994_v30  ;;  %v4059_v36 = vpop.f32.mrb[3].mxu1 }
 0x107   : > { %v4060_v37 = vadd.f32 %v4059_v36, %v4058_v32 }
 0x108   : > { %v842_v38 = vadd.f32 %v4057_v31, %v745_v34  ;;  %v748_v39 = vadd.f32 %v3996_v35, %v5769_v26 }
 0x10a   : > { %4889 = vtanh.f32 %v842_v38  ;;  %v845_v40 = vadd.f32 %v4060_v37, %v748_v39  ;;  %v3997_v41 = vpop.f32.mrb[4].mxu0 }
 0x10b   : > { %v4061_v42 = vpop.f32.mrb[4].mxu1  ;;  %v3998_v43 = vpop.f32.mrb[5].mxu0 }
 0x10c   : > { %4891 = vtanh.f32 %v845_v40  ;;  %v3999_v44 = vadd.f32 %v3998_v43, %v3997_v41  ;;  %v4062_v45 = vpop.f32.mrb[5].mxu1  ;;  %v4000_v46 = vpop.f32.mrb[6].mxu0 }
 0x10d   : > { %v4063_v47 = vadd.f32 %v4062_v45, %v4061_v42  ;;  %v4064_v48 = vpop.f32.mrb[6].mxu1  ;;  %v4001_v49 = vpop.f32.mrb[7].mxu0 }
 0x10e   : > { %v753_v50 = vadd.f32 %v3999_v44, %v5769_v26  ;;  %v4002_v51 = vadd.f32 %v4001_v49, %v4000_v46  ;;  %v4065_v52 = vpop.f32.mrb[7].mxu1 }
 0x10f   : > { %v4066_v53 = vadd.f32 %v4065_v52, %v4064_v48 }
 0x110   : > { %v850_v54 = vadd.f32 %v4063_v47, %v753_v50  ;;  %v756_v55 = vadd.f32 %v4002_v51, %v5769_v26 }
 0x112   : > { %4893 = vtanh.f32 %v850_v54  ;;  %v853_v56 = vadd.f32 %v4066_v53, %v756_v55  ;;  %v4003_v57 = vpop.f32.mrb[8].mxu0 }
 0x113   : > { %v4067_v58 = vpop.f32.mrb[8].mxu1  ;;  %v4004_v59 = vpop.f32.mrb[9].mxu0 }
 0x114   : > { %v4890_v60 = vpop.eup %4889  ;;  %4895 = vtanh.f32 %v853_v56  ;;  %v4005_v61 = vadd.f32 %v4004_v59, %v4003_v57  ;;  %v4068_v62 = vpop.f32.mrb[9].mxu1 }
 0x115   : > { %v4006_v63 = vpop.f32.mrb[10].mxu0  ;;  %v4069_v0 = vadd.f32 %v4068_v62, %v4067_v58  ;;  %v4070_v1 = vpop.f32.mrb[10].mxu1  ;;  %4311 = vmatprep.mubr.msk.f32.mxu0 %vm933_vm0, %v4890_v60 }
 0x116   : > { %v4007_v2 = vpop.f32.mrb[11].mxu0  ;;  %v4892_v3 = vpop.eup %4891  ;;  %v761_v4 = vadd.f32 %v4005_v61, %v5769_v26 }
 0x117   : > { %v4008_v5 = vadd.f32 %v4007_v2, %v4006_v63  ;;  %v4071_v6 = vpop.f32.mrb[11].mxu1  ;;  %4312 = vmatmul.mubr.msk.f32.vlgmr.msra.gmra.mrb[32].mxu0 %vm933_vm0, %v4892_v3 }
 0x118   : > { %v4072_v7 = vadd.f32 %v4071_v6, %v4070_v1  ;;  %v858_v8 = vadd.f32 %v4069_v0, %v761_v4 }
 0x119   : > { %v764_v9 = vadd.f32 %v4008_v5, %v5769_v26 }
 0x11a   : > { %4897 = vtanh.f32 %v858_v8  ;;  %v4009_v11 = vpop.f32.mrb[12].mxu0 }
 0x11b   : > { %v861_v10 = vadd.f32 %v4072_v7, %v764_v9  ;;  %v4073_v12 = vpop.f32.mrb[12].mxu1  ;;  %v4010_v13 = vpop.f32.mrb[13].mxu0 }
 0x11c   : > { %v4894_v14 = vpop.eup %4893  ;;  %v4011_v15 = vadd.f32 %v4010_v13, %v4009_v11  ;;  %v4074_v16 = vpop.f32.mrb[13].mxu1 }
 0x11d   : > { %4899 = vtanh.f32 %v861_v10  ;;  %v4012_v17 = vpop.f32.mrb[14].mxu0  ;;  %v4075_v18 = vadd.f32 %v4074_v16, %v4073_v12  ;;  %v4076_v19 = vpop.f32.mrb[14].mxu1  ;;  %4314 = vmatprep.mubr.msk.f32.mxu0 %vm933_vm0, %v4894_v14 }
 0x11e   : > { %v4013_v20 = vpop.f32.mrb[15].mxu0  ;;  %v4896_v21 = vpop.eup %4895  ;;  %v769_v22 = vadd.f32 %v4011_v15, %v5769_v26 }
 0x11f   : > { %v4014_v23 = vadd.f32 %v4013_v20, %v4012_v17  ;;  %v4077_v24 = vpop.f32.mrb[15].mxu1  ;;  %4315 = vmatmul.mubr.msk.f32.gmra.mrb[34].mxu0 %vm933_vm0, %v4896_v21 }
 0x120   : > { %v4078_v25 = vadd.f32 %v4077_v24, %v4076_v19  ;;  %v866_v27 = vadd.f32 %v4075_v18, %v769_v22 }
 0x121   : > { %v772_v28 = vadd.f32 %v4014_v23, %v5769_v26 }
 0x122   : > { %4901 = vtanh.f32 %v866_v27  ;;  %v4015_v30 = vpop.f32.mrb[16].mxu0 }
 0x123   : > { %v869_v29 = vadd.f32 %v4078_v25, %v772_v28  ;;  %v4079_v31 = vpop.f32.mrb[16].mxu1  ;;  %v4016_v32 = vpop.f32.mrb[17].mxu0 }
 0x124   : > { %v4898_v33 = vpop.eup %4897  ;;  %v4017_v34 = vadd.f32 %v4016_v32, %v4015_v30  ;;  %v4080_v35 = vpop.f32.mrb[17].mxu1 }
 0x125   : > { %4903 = vtanh.f32 %v869_v29  ;;  %v4018_v36 = vpop.f32.mrb[18].mxu0  ;;  %v4081_v37 = vadd.f32 %v4080_v35, %v4079_v31  ;;  %v4082_v38 = vpop.f32.mrb[18].mxu1  ;;  %4317 = vmatprep.mubr.msk.f32.mxu0 %vm933_vm0, %v4898_v33 }
 0x126   : > { %v4019_v39 = vpop.f32.mrb[19].mxu0  ;;  %v777_v41 = vadd.f32 %v4017_v34, %v5769_v26  ;;  %v4083_v43 = vpop.f32.mrb[19].mxu1 }
 0x127   : > { %v4900_v40 = vpop.eup %4899  ;;  %v4020_v42 = vadd.f32 %v4019_v39, %v4018_v36  ;;  %v4084_v44 = vadd.f32 %v4083_v43, %v4082_v38  ;;  %v3720_v43 = vld [vmem:[%s6634_s2 + $0x80] sm:$0xff] }
 0x128   : > { %4318 = vmatmul.mubr.msk.f32.gmra.mrb[36].mxu0 %vm933_vm0, %v4900_v40  ;;  %v874_v45 = vadd.f32 %v4081_v37, %v777_v41 }
 0x129   : > { %v780_v46 = vadd.f32 %v4020_v42, %v5769_v26 }
 0x12a   : > { %4905 = vtanh.f32 %v874_v45  ;;  %v4021_v48 = vpop.f32.mrb[20].mxu0 }
 0x12b   : > { %v877_v47 = vadd.f32 %v4084_v44, %v780_v46  ;;  %v4085_v49 = vpop.f32.mrb[20].mxu1  ;;  %v4022_v50 = vpop.f32.mrb[21].mxu0  ;;  %v3722_v44 = vld [vmem:[%s6634_s2 + $0x90] sm:$0xff]  ;;  %v3723_v46 = vld [vmem:[%s6634_s2 + $0x98] sm:$0xff] }
 0x12c   : > { %v4902_v51 = vpop.eup %4901  ;;  %v4023_v52 = vadd.f32 %v4022_v50, %v4021_v48  ;;  %v4086_v53 = vpop.f32.mrb[21].mxu1  ;;  %v3724_v48 = vld [vmem:[%s6634_s2 + $0xa0] sm:$0xff] }
 0x12d   : > { %4907 = vtanh.f32 %v877_v47  ;;  %v4024_v54 = vpop.f32.mrb[22].mxu0  ;;  %v4087_v55 = vadd.f32 %v4086_v53, %v4085_v49  ;;  %v4088_v56 = vpop.f32.mrb[22].mxu1  ;;  %4320 = vmatprep.mubr.msk.f32.mxu0 %vm933_vm0, %v4902_v51  ;;  %v4651_v47 = vpack.c.bf16 %v3723_v46, %v3722_v44  ;;  %v3725_v49 = vld [vmem:[%s6634_s2 + $0xa8] sm:$0xff]  ;;  %v5824_v51 = vld [vmem:[%s6636_s4 + $0x1] ss:$0 sm:$0xff] }
 0x12e   : > { %v4025_v57 = vpop.f32.mrb[23].mxu0  ;;  %v785_v59 = vadd.f32 %v4023_v52, %v5769_v26  ;;  %v4089_v61 = vpop.f32.mrb[23].mxu1  ;;  %v4655_v50 = vpack.c.bf16 %v3725_v49, %v3724_v48  ;;  %v3750_v46 = vld [vmem:[%s6634_s2 + $0xe8] sm:$0xff]  ;;  %v5885_v48 = vld [vmem:[%s6636_s4 + $0x2] ss:$0 sm:$0xff] }
 0x12f   : > { %v4904_v58 = vpop.eup %4903  ;;  %v4026_v60 = vadd.f32 %v4025_v57, %v4024_v54  ;;  %v4090_v62 = vadd.f32 %v4089_v61, %v4088_v56 }
 0x130   : > { %4321 = vmatmul.mubr.msk.f32.gmra.mrb[38].mxu0 %vm933_vm0, %v4904_v58  ;;  %v882_v63 = vadd.f32 %v4087_v55, %v785_v59 }
 0x131   : > { %v788_v0 = vadd.f32 %v4026_v60, %v5769_v26 }
 0x132   : > { %4909 = vtanh.f32 %v882_v63  ;;  %v4027_v2 = vpop.f32.mrb[24].mxu0 }
 0x133   : > { %v885_v1 = vadd.f32 %v4090_v62, %v788_v0  ;;  %v4091_v3 = vpop.f32.mrb[24].mxu1  ;;  %v4028_v4 = vpop.f32.mrb[25].mxu0 }
 0x134   : > { %v4906_v5 = vpop.eup %4905  ;;  %v4029_v6 = vadd.f32 %v4028_v4, %v4027_v2  ;;  %v4092_v7 = vpop.f32.mrb[25].mxu1 }
 0x135   : > { %4911 = vtanh.f32 %v885_v1  ;;  %v4030_v8 = vpop.f32.mrb[26].mxu0  ;;  %v4093_v9 = vadd.f32 %v4092_v7, %v4091_v3  ;;  %v4094_v10 = vpop.f32.mrb[26].mxu1  ;;  %4323 = vmatprep.mubr.msk.f32.mxu0 %vm933_vm0, %v4906_v5 }
 0x136   : > { %v4031_v11 = vpop.f32.mrb[27].mxu0  ;;  %v793_v13 = vadd.f32 %v4029_v6, %v5769_v26  ;;  %v4095_v15 = vpop.f32.mrb[27].mxu1 }
 0x137   : > { %v4908_v12 = vpop.eup %4907  ;;  %v4032_v14 = vadd.f32 %v4031_v11, %v4030_v8  ;;  %v4096_v16 = vadd.f32 %v4095_v15, %v4094_v10 }
 0x138   : > { %4324 = vmatmul.mubr.msk.f32.gmra.mrb[40].mxu0 %vm933_vm0, %v4908_v12  ;;  %v890_v17 = vadd.f32 %v4093_v9, %v793_v13 }
 0x139   : > { %v796_v18 = vadd.f32 %v4032_v14, %v5769_v26 }
 0x13a   : > { %4913 = vtanh.f32 %v890_v17  ;;  %v4033_v20 = vpop.f32.mrb[28].mxu0 }
 0x13b   : > { %v893_v19 = vadd.f32 %v4096_v16, %v796_v18  ;;  %v4097_v21 = vpop.f32.mrb[28].mxu1  ;;  %v4034_v22 = vpop.f32.mrb[29].mxu0 }
 0x13c   : > { %v4910_v23 = vpop.eup %4909  ;;  %v4035_v24 = vadd.f32 %v4034_v22, %v4033_v20  ;;  %v4098_v25 = vpop.f32.mrb[29].mxu1 }
 0x13d   : > { %4915 = vtanh.f32 %v893_v19  ;;  %v4036_v27 = vpop.f32.mrb[30].mxu0  ;;  %v4099_v28 = vadd.f32 %v4098_v25, %v4097_v21  ;;  %v4100_v29 = vpop.f32.mrb[30].mxu1  ;;  %4326 = vmatprep.mubr.msk.f32.mxu0 %vm933_vm0, %v4910_v23 }
 0x13e   : > { %v4037_v30 = vpop.f32.mrb[31].mxu0  ;;  %v801_v32 = vadd.f32 %v4035_v24, %v5769_v26  ;;  %v4101_v34 = vpop.f32.mrb[31].mxu1 }
 0x13f   : > { %v4912_v31 = vpop.eup %4911  ;;  %v4038_v33 = vadd.f32 %v4037_v30, %v4036_v27  ;;  %v4102_v35 = vadd.f32 %v4101_v34, %v4100_v29 }
 0x140   : > { %4327 = vmatmul.mubr.msk.f32.gmra.mrb[42].mxu0 %vm933_vm0, %v4912_v31  ;;  %v898_v36 = vadd.f32 %v4099_v28, %v801_v32 }
 0x141   : > { %v804_v37 = vadd.f32 %v4038_v33, %v5769_v26  ;;  %v3721_v26 = vld [vmem:[%s6634_s2 + $0x88] sm:$0xff] }
 0x142   : > { %4917 = vtanh.f32 %v898_v36  ;;  %v4647_v45 = vpack.c.bf16 %v3721_v26, %v3720_v43  ;;  %v3748_v26 = vld [vmem:[%s6634_s2 + $0xd8] sm:$0xff] }
 0x143   : > { %v901_v38 = vadd.f32 %v4102_v35, %v804_v37  ;;  %v3726_v37 = vld [vmem:[%s6634_s2 + $0xb0] sm:$0xff] }
 0x144   : > { %v4914_v39 = vpop.eup %4913  ;;  %4648 = vmatprep.subr.bf16.mxu0 %v4647_v45 }
 0x145   : > { %4919 = vtanh.f32 %v901_v38  ;;  %4329 = vmatprep.mubr.msk.f32.mxu0 %vm933_vm0, %v4914_v39  ;;  %4650 = vmatpush3.bf16.msra.mxu0 %v4647_v45  ;;  %v3727_v38 = vld [vmem:[%s6634_s2 + $0xb8] sm:$0xff]  ;;  %v3749_v45 = vld [vmem:[%s6634_s2 + $0xe0] sm:$0xff] }
 0x146   : > { %4652 = vmatprep.subr.bf16.mxu0 %v4651_v47  ;;  %v4659_v39 = vpack.c.bf16 %v3727_v38, %v3726_v37  ;;  %v3770_v37 = vld [vmem:[%s6634_s2 + $0x100] sm:$0xff]  ;;  %v3771_v38 = vld [vmem:[%s6634_s2 + $0x108] sm:$0xff] }
 0x147   : > { %v4916_v40 = vpop.eup %4915 }
 0x148   : > { %4330 = vmatmul.mubr.msk.f32.gmra.mrb[44].mxu0 %vm933_vm0, %v4916_v40  ;;  %v3745_v40 = vld [vmem:[%s6634_s2 + $0xc0] sm:$0xff] }
 0x149   : > { %4654 = vmatpush3.bf16.msra.mxu0 %v4651_v47  ;;  %v4671_v47 = vpack.c.bf16 %v3750_v46, %v3749_v45  ;;  %v5946_v45 = vld [vmem:[%s6636_s4 + $0x3] ss:$0 sm:$0xff] }
 0x14a   : > { %4656 = vmatprep.subr.bf16.mxu0 %v4655_v50 }
 0x14c   : > { %v4918_v41 = vpop.eup %4917 }
 0x14d   : > { %4332 = vmatprep.mubr.msk.f32.mxu0 %vm933_vm0, %v4918_v41  ;;  %4658 = vmatpush3.bf16.msra.mxu0 %v4655_v50  ;;  %v3746_v41 = vld [vmem:[%s6634_s2 + $0xc8] sm:$0xff] }
 0x14e   : > { %4660 = vmatprep.subr.bf16.mxu0 %v4659_v39  ;;  %v4663_v43 = vpack.c.bf16 %v3746_v41, %v3745_v40  ;;  %v4679_v40 = vpack.c.bf16 %v3771_v38, %v3770_v37  ;;  %v3773_v41 = vld [vmem:[%s6634_s2 + $0x118] sm:$0xff] }
 0x14f   : > { %v4920_v42 = vpop.eup %4919  ;;  %v3798_v38 = vld [vmem:[%s6634_s2 + $0x158] sm:$0xff] }
 0x150   : > { %4333 = vmatmul.mubr.msk.f32.gmra.mrb[46].mxu0 %vm933_vm0, %v4920_v42  ;;  %v3747_v42 = vld [vmem:[%s6634_s2 + $0xd0] sm:$0xff]  ;;  %4664 = vmatprep.subr.bf16.mxu1 %v4663_v43 }
 0x151   : > { %4662 = vmatpush3.bf16.msra.mxu0 %v4659_v39  ;;  %v4667_v44 = vpack.c.bf16 %v3748_v26, %v3747_v42  ;;  %v3772_v39 = vld [vmem:[%s6634_s2 + $0x110] sm:$0xff]  ;;  %v3775_v26 = vld [vmem:[%s6634_s2 + $0x128] sm:$0xff] }
 0x152   : > { %v4683_v42 = vpack.c.bf16 %v3773_v41, %v3772_v39  ;;  %4680 = vmatprep.subr.bf16.mxu0 %v4679_v40  ;;  %v3800_v41 = vld [vmem:[%s6634_s2 + $0x168] sm:$0xff] }
 0x1ea   : > { %v4313_v52 = vpop.f32.mrb[32].mxu0 }
 0x1eb   : > { %v1054_v53 = vadd.f32 %v4313_v52, %v5824_v51  ;;  %v1048_v54 = vpop.f32.mrb[33].mxu0 }
 0x1ec   : > { %v1049_v55 = vadd.f32 %v5824_v51, %v1048_v54 }
 0x1ee   : > { %4921 = vtanh.f32 %v1049_v55 }
 0x1ef   : > { %4923 = vtanh.f32 %v1054_v53 }
 0x1f2   : > { %v4316_v56 = vpop.f32.mrb[34].mxu0 }
 0x1f3   : > { %v1064_v57 = vadd.f32 %v4316_v56, %v5824_v51  ;;  %v1058_v58 = vpop.f32.mrb[35].mxu0 }
 0x1f4   : > { %v1059_v59 = vadd.f32 %v5824_v51, %v1058_v58 }
 0x1f6   : > { %4925 = vtanh.f32 %v1059_v59 }
 0x1f7   : > { %4927 = vtanh.f32 %v1064_v57 }
 0x1f8   : > { %v4922_v60 = vpop.eup %4921 }
 0x1f9   : > { %v4924_v61 = vpop.eup %4923  ;;  %4351 = vmatprep.mubr.msk.f32.mxu1 %vm933_vm0, %v4922_v60 }
 0x1fa   : > { %4352 = vmatmul.mubr.msk.f32.vlgmr.msra.gmra.mrb[32].mxu1 %vm933_vm0, %v4924_v61 }
 0x1fb   : > { %v4319_v62 = vpop.f32.mrb[36].mxu0  ;;  %4666 = vmatpush3.bf16.msra.mxu1 %v4663_v43  ;;  %v3774_v43 = vld [vmem:[%s6634_s2 + $0x120] sm:$0xff] }
 0x1fc   : > { %v1074_v63 = vadd.f32 %v4319_v62, %v5824_v51  ;;  %v1068_v0 = vpop.f32.mrb[37].mxu0  ;;  %4668 = vmatprep.subr.bf16.mxu1 %v4667_v44 }
 0x1fd   : > { %v1069_v1 = vadd.f32 %v5824_v51, %v1068_v0 }
 0x1ff   : > { %4929 = vtanh.f32 %v1069_v1  ;;  %4670 = vmatpush3.bf16.msra.mxu1 %v4667_v44  ;;  %v4687_v44 = vpack.c.bf16 %v3775_v26, %v3774_v43  ;;  %v6007_v43 = vld [vmem:[%s6636_s4 + $0x4] ss:$0 sm:$0xff] }
 0x200   : > { %4931 = vtanh.f32 %v1074_v63  ;;  %v4926_v2 = vpop.eup %4925  ;;  %4672 = vmatprep.subr.bf16.mxu1 %v4671_v47 }
 0x201   : > { %v4928_v3 = vpop.eup %4927  ;;  %4354 = vmatprep.mubr.msk.f32.mxu1 %vm933_vm0, %v4926_v2 }
 0x202   : > { %4355 = vmatmul.mubr.msk.f32.gmra.mrb[34].mxu1 %vm933_vm0, %v4928_v3 }
 0x203   : > { %v4322_v4 = vpop.f32.mrb[38].mxu0  ;;  %4674 = vmatpush3.bf16.msra.mxu1 %v4671_v47 }
 0x204   : > { %v1084_v5 = vadd.f32 %v4322_v4, %v5824_v51  ;;  %v1078_v6 = vpop.f32.mrb[39].mxu0 }
 0x205   : > { %v1079_v7 = vadd.f32 %v5824_v51, %v1078_v6 }
 0x207   : > { %4933 = vtanh.f32 %v1079_v7 }
 0x208   : > { %4935 = vtanh.f32 %v1084_v5 }
 0x209   : > { %v4930_v8 = vpop.eup %4929 }
 0x20a   : > { %v4932_v9 = vpop.eup %4931  ;;  %4357 = vmatprep.mubr.msk.f32.mxu1 %vm933_vm0, %v4930_v8 }
 0x20b   : > { %v4325_v10 = vpop.f32.mrb[40].mxu0  ;;  %4358 = vmatmul.mubr.msk.f32.gmra.mrb[36].mxu1 %vm933_vm0, %v4932_v9 }
 0x20c   : > { %v1094_v11 = vadd.f32 %v4325_v10, %v5824_v51  ;;  %v1088_v12 = vpop.f32.mrb[41].mxu0 }
 0x20d   : > { %v1089_v13 = vadd.f32 %v5824_v51, %v1088_v12 }
 0x20f   : > { %4937 = vtanh.f32 %v1089_v13 }
 0x210   : > { %4939 = vtanh.f32 %v1094_v11 }
 0x211   : > { %v4934_v14 = vpop.eup %4933 }
 0x212   : > { %v4936_v15 = vpop.eup %4935  ;;  %4360 = vmatprep.mubr.msk.f32.mxu1 %vm933_vm0, %v4934_v14 }
 0x213   : > { %v4328_v16 = vpop.f32.mrb[42].mxu0  ;;  %4361 = vmatmul.mubr.msk.f32.gmra.mrb[38].mxu1 %vm933_vm0, %v4936_v15 }
 0x214   : > { %v1104_v17 = vadd.f32 %v4328_v16, %v5824_v51  ;;  %v1098_v18 = vpop.f32.mrb[43].mxu0 }
 0x215   : > { %v1099_v19 = vadd.f32 %v5824_v51, %v1098_v18 }
 0x217   : > { %4941 = vtanh.f32 %v1099_v19 }
 0x218   : > { %4943 = vtanh.f32 %v1104_v17 }
 0x219   : > { %v4938_v20 = vpop.eup %4937 }
 0x21a   : > { %v4940_v21 = vpop.eup %4939  ;;  %4363 = vmatprep.mubr.msk.f32.mxu1 %vm933_vm0, %v4938_v20 }
 0x21b   : > { %v4331_v22 = vpop.f32.mrb[44].mxu0  ;;  %4364 = vmatmul.mubr.msk.f32.gmra.mrb[40].mxu1 %vm933_vm0, %v4940_v21 }
 0x21c   : > { %v1114_v23 = vadd.f32 %v4331_v22, %v5824_v51  ;;  %v1108_v24 = vpop.f32.mrb[45].mxu0 }
 0x21d   : > { %v1109_v25 = vadd.f32 %v5824_v51, %v1108_v24 }
 0x21f   : > { %4945 = vtanh.f32 %v1109_v25 }
 0x220   : > { %4947 = vtanh.f32 %v1114_v23 }
 0x221   : > { %v4942_v27 = vpop.eup %4941 }
 0x222   : > { %v4944_v28 = vpop.eup %4943  ;;  %4366 = vmatprep.mubr.msk.f32.mxu1 %vm933_vm0, %v4942_v27 }
 0x223   : > { %v4334_v29 = vpop.f32.mrb[46].mxu0  ;;  %4367 = vmatmul.mubr.msk.f32.gmra.mrb[42].mxu1 %vm933_vm0, %v4944_v28 }
 0x224   : > { %v1124_v30 = vadd.f32 %v4334_v29, %v5824_v51  ;;  %v1118_v31 = vpop.f32.mrb[47].mxu0 }
 0x225   : > { %v1119_v32 = vadd.f32 %v5824_v51, %v1118_v31 }
 0x227   : > { %4949 = vtanh.f32 %v1119_v32 }
 0x228   : > { %4951 = vtanh.f32 %v1124_v30 }
 0x229   : > { %v4946_v33 = vpop.eup %4945 }
 0x22a   : > { %v4948_v34 = vpop.eup %4947  ;;  %4369 = vmatprep.mubr.msk.f32.mxu1 %vm933_vm0, %v4946_v33 }
 0x22b   : > { %4370 = vmatmul.mubr.msk.f32.gmra.mrb[44].mxu1 %vm933_vm0, %v4948_v34  ;;  %v3751_v34 = vld [vmem:[%s6634_s2 + $0xf0] sm:$0xff] }
 0x231   : > { %v4950_v35 = vpop.eup %4949 }
 0x232   : > { %v4952_v36 = vpop.eup %4951  ;;  %4372 = vmatprep.mubr.msk.f32.mxu1 %vm933_vm0, %v4950_v35  ;;  %v3752_v35 = vld [vmem:[%s6634_s2 + $0xf8] sm:$0xff] }
 0x233   : > { %4373 = vmatmul.mubr.msk.f32.gmra.mrb[46].mxu1 %vm933_vm0, %v4952_v36  ;;  %v4675_v36 = vpack.c.bf16 %v3752_v35, %v3751_v34  ;;  %v3795_v34 = vld [vmem:[%s6634_s2 + $0x140] sm:$0xff]  ;;  %v3796_v35 = vld [vmem:[%s6634_s2 + $0x148] sm:$0xff] }
 0x234   : > { %v4695_v37 = vpack.c.bf16 %v3796_v35, %v3795_v34  ;;  %v3823_v35 = vld [vmem:[%s6634_s2 + $0x198] sm:$0xff] }
 0x235   : > { %4676 = vmatprep.subr.bf16.mxu1 %v4675_v36 }
 0x236   : > { %4678 = vmatpush3.bf16.msra.mxu1 %v4675_v36  ;;  %v3797_v36 = vld [vmem:[%s6634_s2 + $0x150] sm:$0xff] }
 0x237   : > { %v4699_v39 = vpack.c.bf16 %v3798_v38, %v3797_v36  ;;  %4696 = vmatprep.subr.bf16.mxu1 %v4695_v37  ;;  %v3825_v38 = vld [vmem:[%s6634_s2 + $0x1a8] sm:$0xff] }
 0x2cd   : > { %v4353_v49 = vpop.f32.mrb[32].mxu1 }
 0x2ce   : > { %v1277_v50 = vadd.f32 %v4353_v49, %v5885_v48  ;;  %v1271_v51 = vpop.f32.mrb[33].mxu1 }
 0x2cf   : > { %v1272_v52 = vadd.f32 %v5885_v48, %v1271_v51 }
 0x2d1   : > { %4953 = vtanh.f32 %v1272_v52 }
 0x2d2   : > { %4955 = vtanh.f32 %v1277_v50 }
 0x2d5   : > { %v4356_v53 = vpop.f32.mrb[34].mxu1 }
 0x2d6   : > { %v1287_v54 = vadd.f32 %v4356_v53, %v5885_v48  ;;  %v1281_v55 = vpop.f32.mrb[35].mxu1 }
 0x2d7   : > { %v1282_v56 = vadd.f32 %v5885_v48, %v1281_v55 }
 0x2d9   : > { %4957 = vtanh.f32 %v1282_v56 }
 0x2da   : > { %4959 = vtanh.f32 %v1287_v54 }
 0x2db   : > { %v4954_v57 = vpop.eup %4953 }
 0x2dc   : > { %v4956_v58 = vpop.eup %4955  ;;  %4391 = vmatprep.mubr.msk.f32.mxu0 %vm933_vm0, %v4954_v57 }
 0x2dd   : > { %4392 = vmatmul.mubr.msk.f32.vlgmr.msra.gmra.mrb[48].mxu0 %vm933_vm0, %v4956_v58 }
 0x2de   : > { %v4359_v59 = vpop.f32.mrb[36].mxu1  ;;  %4682 = vmatpush3.bf16.msra.mxu0 %v4679_v40  ;;  %v3799_v40 = vld [vmem:[%s6634_s2 + $0x160] sm:$0xff] }
 0x2df   : > { %v1297_v60 = vadd.f32 %v4359_v59, %v5885_v48  ;;  %v1291_v61 = vpop.f32.mrb[37].mxu1  ;;  %4684 = vmatprep.subr.bf16.mxu0 %v4683_v42 }
 0x2e0   : > { %v1292_v62 = vadd.f32 %v5885_v48, %v1291_v61 }
 0x2e2   : > { %4961 = vtanh.f32 %v1292_v62  ;;  %4686 = vmatpush3.bf16.msra.mxu0 %v4683_v42  ;;  %v4703_v42 = vpack.c.bf16 %v3800_v41, %v3799_v40  ;;  %v6068_v40 = vld [vmem:[%s6636_s4 + $0x5] ss:$0 sm:$0xff] }
 0x2e3   : > { %4963 = vtanh.f32 %v1297_v60  ;;  %v4958_v63 = vpop.eup %4957  ;;  %4688 = vmatprep.subr.bf16.mxu0 %v4687_v44 }
 0x2e4   : > { %v4960_v0 = vpop.eup %4959  ;;  %4394 = vmatprep.mubr.msk.f32.mxu0 %vm933_vm0, %v4958_v63 }
 0x2e5   : > { %4395 = vmatmul.mubr.msk.f32.gmra.mrb[50].mxu0 %vm933_vm0, %v4960_v0 }
 0x2e6   : > { %v4362_v1 = vpop.f32.mrb[38].mxu1  ;;  %4690 = vmatpush3.bf16.msra.mxu0 %v4687_v44 }
 0x2e7   : > { %v1307_v2 = vadd.f32 %v4362_v1, %v5885_v48  ;;  %v1301_v3 = vpop.f32.mrb[39].mxu1 }
 0x2e8   : > { %v1302_v4 = vadd.f32 %v5885_v48, %v1301_v3 }
 0x2ea   : > { %4965 = vtanh.f32 %v1302_v4 }
 0x2eb   : > { %4967 = vtanh.f32 %v1307_v2 }
 0x2ec   : > { %v4962_v5 = vpop.eup %4961 }
 0x2ed   : > { %v4964_v6 = vpop.eup %4963  ;;  %4397 = vmatprep.mubr.msk.f32.mxu0 %vm933_vm0, %v4962_v5 }
 0x2ee   : > { %v4365_v7 = vpop.f32.mrb[40].mxu1  ;;  %4398 = vmatmul.mubr.msk.f32.gmra.mrb[52].mxu0 %vm933_vm0, %v4964_v6 }
 0x2ef   : > { %v1317_v8 = vadd.f32 %v4365_v7, %v5885_v48  ;;  %v1311_v9 = vpop.f32.mrb[41].mxu1 }
 0x2f0   : > { %v1312_v10 = vadd.f32 %v5885_v48, %v1311_v9 }
 0x2f2   : > { %4969 = vtanh.f32 %v1312_v10 }
 0x2f3   : > { %4971 = vtanh.f32 %v1317_v8 }
 0x2f4   : > { %v4966_v11 = vpop.eup %4965 }
 0x2f5   : > { %v4968_v12 = vpop.eup %4967  ;;  %4400 = vmatprep.mubr.msk.f32.mxu0 %vm933_vm0, %v4966_v11 }
 0x2f6   : > { %v4368_v13 = vpop.f32.mrb[42].mxu1  ;;  %4401 = vmatmul.mubr.msk.f32.gmra.mrb[54].mxu0 %vm933_vm0, %v4968_v12 }
 0x2f7   : > { %v1327_v14 = vadd.f32 %v4368_v13, %v5885_v48  ;;  %v1321_v15 = vpop.f32.mrb[43].mxu1 }
 0x2f8   : > { %v1322_v16 = vadd.f32 %v5885_v48, %v1321_v15 }
 0x2fa   : > { %4973 = vtanh.f32 %v1322_v16 }
 0x2fb   : > { %4975 = vtanh.f32 %v1327_v14 }
 0x2fc   : > { %v4970_v17 = vpop.eup %4969 }
 0x2fd   : > { %v4972_v18 = vpop.eup %4971  ;;  %4403 = vmatprep.mubr.msk.f32.mxu0 %vm933_vm0, %v4970_v17 }
 0x2fe   : > { %v4371_v19 = vpop.f32.mrb[44].mxu1  ;;  %4404 = vmatmul.mubr.msk.f32.gmra.mrb[56].mxu0 %vm933_vm0, %v4972_v18 }
 0x2ff   : > { %v1337_v20 = vadd.f32 %v4371_v19, %v5885_v48  ;;  %v1331_v21 = vpop.f32.mrb[45].mxu1 }
 0x300   : > { %v1332_v22 = vadd.f32 %v5885_v48, %v1331_v21 }
 0x302   : > { %4977 = vtanh.f32 %v1332_v22 }
 0x303   : > { %4979 = vtanh.f32 %v1337_v20 }
 0x304   : > { %v4974_v23 = vpop.eup %4973 }
 0x305   : > { %v4976_v24 = vpop.eup %4975  ;;  %4406 = vmatprep.mubr.msk.f32.mxu0 %vm933_vm0, %v4974_v23 }
 0x306   : > { %v4374_v25 = vpop.f32.mrb[46].mxu1  ;;  %4407 = vmatmul.mubr.msk.f32.gmra.mrb[58].mxu0 %vm933_vm0, %v4976_v24 }
 0x307   : > { %v1347_v27 = vadd.f32 %v4374_v25, %v5885_v48  ;;  %v1341_v28 = vpop.f32.mrb[47].mxu1 }
 0x308   : > { %v1342_v29 = vadd.f32 %v5885_v48, %v1341_v28 }
 0x30a   : > { %4981 = vtanh.f32 %v1342_v29 }
 0x30b   : > { %4983 = vtanh.f32 %v1347_v27 }
 0x30c   : > { %v4978_v30 = vpop.eup %4977 }
 0x30d   : > { %v4980_v31 = vpop.eup %4979  ;;  %4409 = vmatprep.mubr.msk.f32.mxu0 %vm933_vm0, %v4978_v30 }
 0x30e   : > { %4410 = vmatmul.mubr.msk.f32.gmra.mrb[60].mxu0 %vm933_vm0, %v4980_v31  ;;  %v3776_v31 = vld [vmem:[%s6634_s2 + $0x130] sm:$0xff] }
 0x314   : > { %v4982_v32 = vpop.eup %4981 }
 0x315   : > { %v4984_v33 = vpop.eup %4983  ;;  %4412 = vmatprep.mubr.msk.f32.mxu0 %vm933_vm0, %v4982_v32  ;;  %v3777_v32 = vld [vmem:[%s6634_s2 + $0x138] sm:$0xff] }
 0x316   : > { %4413 = vmatmul.mubr.msk.f32.gmra.mrb[62].mxu0 %vm933_vm0, %v4984_v33  ;;  %v4691_v33 = vpack.c.bf16 %v3777_v32, %v3776_v31  ;;  %v3820_v31 = vld [vmem:[%s6634_s2 + $0x180] sm:$0xff]  ;;  %v3821_v32 = vld [vmem:[%s6634_s2 + $0x188] sm:$0xff] }
 0x317   : > { %v4711_v34 = vpack.c.bf16 %v3821_v32, %v3820_v31  ;;  %v3848_v32 = vld [vmem:[%s6634_s2 + $0x1d8] sm:$0xff] }
 0x318   : > { %4692 = vmatprep.subr.bf16.mxu0 %v4691_v33 }
 0x319   : > { %4694 = vmatpush3.bf16.msra.mxu0 %v4691_v33  ;;  %v3822_v33 = vld [vmem:[%s6634_s2 + $0x190] sm:$0xff] }
 0x31a   : > { %v4715_v36 = vpack.c.bf16 %v3823_v35, %v3822_v33  ;;  %4712 = vmatprep.subr.bf16.mxu0 %v4711_v34  ;;  %v3850_v35 = vld [vmem:[%s6634_s2 + $0x1e8] sm:$0xff] }
 0x3b0   : > { %v4393_v46 = vpop.f32.mrb[48].mxu0 }
 0x3b1   : > { %v1500_v47 = vadd.f32 %v4393_v46, %v5946_v45  ;;  %v1494_v48 = vpop.f32.mrb[49].mxu0 }
 0x3b2   : > { %v1495_v49 = vadd.f32 %v5946_v45, %v1494_v48 }
 0x3b4   : > { %4985 = vtanh.f32 %v1495_v49 }
 0x3b5   : > { %4987 = vtanh.f32 %v1500_v47 }
 0x3b8   : > { %v4396_v50 = vpop.f32.mrb[50].mxu0 }
 0x3b9   : > { %v1510_v51 = vadd.f32 %v4396_v50, %v5946_v45  ;;  %v1504_v52 = vpop.f32.mrb[51].mxu0 }
 0x3ba   : > { %v1505_v53 = vadd.f32 %v5946_v45, %v1504_v52 }
 0x3bc   : > { %4989 = vtanh.f32 %v1505_v53 }
 0x3bd   : > { %4991 = vtanh.f32 %v1510_v51 }
 0x3be   : > { %v4986_v54 = vpop.eup %4985 }
 0x3bf   : > { %v4988_v55 = vpop.eup %4987  ;;  %4431 = vmatprep.mubr.msk.f32.mxu1 %vm933_vm0, %v4986_v54 }
 0x3c0   : > { %4432 = vmatmul.mubr.msk.f32.vlgmr.msra.gmra.mrb[48].mxu1 %vm933_vm0, %v4988_v55 }
 0x3c1   : > { %v4399_v56 = vpop.f32.mrb[52].mxu0  ;;  %4698 = vmatpush3.bf16.msra.mxu1 %v4695_v37  ;;  %v3824_v37 = vld [vmem:[%s6634_s2 + $0x1a0] sm:$0xff] }
 0x3c2   : > { %v1520_v57 = vadd.f32 %v4399_v56, %v5946_v45  ;;  %v1514_v58 = vpop.f32.mrb[53].mxu0  ;;  %4700 = vmatprep.subr.bf16.mxu1 %v4699_v39 }
 0x3c3   : > { %v1515_v59 = vadd.f32 %v5946_v45, %v1514_v58 }
 0x3c5   : > { %4993 = vtanh.f32 %v1515_v59  ;;  %4702 = vmatpush3.bf16.msra.mxu1 %v4699_v39  ;;  %v4719_v39 = vpack.c.bf16 %v3825_v38, %v3824_v37  ;;  %v6129_v37 = vld [vmem:[%s6636_s4 + $0x6] ss:$0 sm:$0xff] }
 0x3c6   : > { %4995 = vtanh.f32 %v1520_v57  ;;  %v4990_v60 = vpop.eup %4989  ;;  %4704 = vmatprep.subr.bf16.mxu1 %v4703_v42 }
 0x3c7   : > { %v4992_v61 = vpop.eup %4991  ;;  %4434 = vmatprep.mubr.msk.f32.mxu1 %vm933_vm0, %v4990_v60 }
 0x3c8   : > { %4435 = vmatmul.mubr.msk.f32.gmra.mrb[50].mxu1 %vm933_vm0, %v4992_v61 }
 0x3c9   : > { %v4402_v62 = vpop.f32.mrb[54].mxu0  ;;  %4706 = vmatpush3.bf16.msra.mxu1 %v4703_v42 }
 0x3ca   : > { %v1530_v63 = vadd.f32 %v4402_v62, %v5946_v45  ;;  %v1524_v0 = vpop.f32.mrb[55].mxu0 }
 0x3cb   : > { %v1525_v1 = vadd.f32 %v5946_v45, %v1524_v0 }
 0x3cd   : > { %4997 = vtanh.f32 %v1525_v1 }
 0x3ce   : > { %4999 = vtanh.f32 %v1530_v63 }
 0x3cf   : > { %v4994_v2 = vpop.eup %4993 }
 0x3d0   : > { %v4996_v3 = vpop.eup %4995  ;;  %4437 = vmatprep.mubr.msk.f32.mxu1 %vm933_vm0, %v4994_v2 }
 0x3d1   : > { %v4405_v4 = vpop.f32.mrb[56].mxu0  ;;  %4438 = vmatmul.mubr.msk.f32.gmra.mrb[52].mxu1 %vm933_vm0, %v4996_v3 }
 0x3d2   : > { %v1540_v5 = vadd.f32 %v4405_v4, %v5946_v45  ;;  %v1534_v6 = vpop.f32.mrb[57].mxu0 }
 0x3d3   : > { %v1535_v7 = vadd.f32 %v5946_v45, %v1534_v6 }
 0x3d5   : > { %5001 = vtanh.f32 %v1535_v7 }
 0x3d6   : > { %5003 = vtanh.f32 %v1540_v5 }
 0x3d7   : > { %v4998_v8 = vpop.eup %4997 }
 0x3d8   : > { %v5000_v9 = vpop.eup %4999  ;;  %4440 = vmatprep.mubr.msk.f32.mxu1 %vm933_vm0, %v4998_v8 }
 0x3d9   : > { %v4408_v10 = vpop.f32.mrb[58].mxu0  ;;  %4441 = vmatmul.mubr.msk.f32.gmra.mrb[54].mxu1 %vm933_vm0, %v5000_v9 }
 0x3da   : > { %v1550_v11 = vadd.f32 %v4408_v10, %v5946_v45  ;;  %v1544_v12 = vpop.f32.mrb[59].mxu0 }
 0x3db   : > { %v1545_v13 = vadd.f32 %v5946_v45, %v1544_v12 }
 0x3dd   : > { %5005 = vtanh.f32 %v1545_v13 }
 0x3de   : > { %5007 = vtanh.f32 %v1550_v11 }
 0x3df   : > { %v5002_v14 = vpop.eup %5001 }
 0x3e0   : > { %v5004_v15 = vpop.eup %5003  ;;  %4443 = vmatprep.mubr.msk.f32.mxu1 %vm933_vm0, %v5002_v14 }
 0x3e1   : > { %v4411_v16 = vpop.f32.mrb[60].mxu0  ;;  %4444 = vmatmul.mubr.msk.f32.gmra.mrb[56].mxu1 %vm933_vm0, %v5004_v15 }
 0x3e2   : > { %v1560_v17 = vadd.f32 %v4411_v16, %v5946_v45  ;;  %v1554_v18 = vpop.f32.mrb[61].mxu0 }
 0x3e3   : > { %v1555_v19 = vadd.f32 %v5946_v45, %v1554_v18 }
 0x3e5   : > { %5009 = vtanh.f32 %v1555_v19 }
 0x3e6   : > { %5011 = vtanh.f32 %v1560_v17 }
 0x3e7   : > { %v5006_v20 = vpop.eup %5005 }
 0x3e8   : > { %v5008_v21 = vpop.eup %5007  ;;  %4446 = vmatprep.mubr.msk.f32.mxu1 %vm933_vm0, %v5006_v20 }
 0x3e9   : > { %v4414_v22 = vpop.f32.mrb[62].mxu0  ;;  %4447 = vmatmul.mubr.msk.f32.gmra.mrb[58].mxu1 %vm933_vm0, %v5008_v21 }
 0x3ea   : > { %v1570_v23 = vadd.f32 %v4414_v22, %v5946_v45  ;;  %v1564_v24 = vpop.f32.mrb[63].mxu0 }
 0x3eb   : > { %v1565_v25 = vadd.f32 %v5946_v45, %v1564_v24 }
 0x3ed   : > { %5013 = vtanh.f32 %v1565_v25 }
 0x3ee   : > { %5015 = vtanh.f32 %v1570_v23 }
 0x3ef   : > { %v5010_v27 = vpop.eup %5009 }
 0x3f0   : > { %v5012_v28 = vpop.eup %5011  ;;  %4449 = vmatprep.mubr.msk.f32.mxu1 %vm933_vm0, %v5010_v27 }
 0x3f1   : > { %4450 = vmatmul.mubr.msk.f32.gmra.mrb[60].mxu1 %vm933_vm0, %v5012_v28  ;;  %v3801_v28 = vld [vmem:[%s6634_s2 + $0x170] sm:$0xff] }
 0x3f7   : > { %v5014_v29 = vpop.eup %5013 }
 0x3f8   : > { %v5016_v30 = vpop.eup %5015  ;;  %4452 = vmatprep.mubr.msk.f32.mxu1 %vm933_vm0, %v5014_v29  ;;  %v3802_v29 = vld [vmem:[%s6634_s2 + $0x178] sm:$0xff] }
 0x3f9   : > { %4453 = vmatmul.mubr.msk.f32.gmra.mrb[62].mxu1 %vm933_vm0, %v5016_v30  ;;  %v4707_v30 = vpack.c.bf16 %v3802_v29, %v3801_v28  ;;  %v3845_v28 = vld [vmem:[%s6634_s2 + $0x1c0] sm:$0xff]  ;;  %v3846_v29 = vld [vmem:[%s6634_s2 + $0x1c8] sm:$0xff] }
 0x3fa   : > { %v4727_v31 = vpack.c.bf16 %v3846_v29, %v3845_v28  ;;  %v4873_v28 = vld [vmem:[%s6635_s3 + $0x24] ss:$16 sps:$4 sm:$0xff]   ;;  %v4871_v29 = vld [vmem:[%s6635_s3 + $0x20] ss:$16 sps:$4 sm:$0xff]  }
 0x3fb   : > { %4708 = vmatprep.subr.bf16.mxu1 %v4707_v30 }
 0x3fc   : > { %4710 = vmatpush3.bf16.msra.mxu1 %v4707_v30  ;;  %v3847_v30 = vld [vmem:[%s6634_s2 + $0x1d0] sm:$0xff] }
 0x3fd   : > { %v4731_v33 = vpack.c.bf16 %v3848_v32, %v3847_v30  ;;  %4728 = vmatprep.subr.bf16.mxu1 %v4727_v31  ;;  %v6187_v30 = vld [vmem:[%s6636_s4 + $0x7] ss:$0 sm:$0xff] }
 0x493   : > { %v4433_v26 = vpop.f32.mrb[48].mxu1 }
 0x494   : > { %v1723_v44 = vadd.f32 %v4433_v26, %v6007_v43  ;;  %v1717_v45 = vpop.f32.mrb[49].mxu1 }
 0x495   : > { %v1718_v46 = vadd.f32 %v6007_v43, %v1717_v45 }
 0x497   : > { %5017 = vtanh.f32 %v1718_v46 }
 0x498   : > { %5019 = vtanh.f32 %v1723_v44 }
 0x49b   : > { %v4436_v47 = vpop.f32.mrb[50].mxu1 }
 0x49c   : > { %v1733_v48 = vadd.f32 %v4436_v47, %v6007_v43  ;;  %v1727_v49 = vpop.f32.mrb[51].mxu1 }
 0x49d   : > { %v1728_v50 = vadd.f32 %v6007_v43, %v1727_v49 }
 0x49f   : > { %5021 = vtanh.f32 %v1728_v50 }
 0x4a0   : > { %5023 = vtanh.f32 %v1733_v48 }
 0x4a1   : > { %v5018_v51 = vpop.eup %5017 }
 0x4a2   : > { %v5020_v52 = vpop.eup %5019  ;;  %4471 = vmatprep.mubr.msk.f32.mxu0 %vm933_vm0, %v5018_v51 }
 0x4a3   : > { %4472 = vmatmul.mubr.msk.f32.vlgmr.msra.gmra.mrb[64].mxu0 %vm933_vm0, %v5020_v52 }
 0x4a4   : > { %v4439_v53 = vpop.f32.mrb[52].mxu1  ;;  %4714 = vmatpush3.bf16.msra.mxu0 %v4711_v34  ;;  %v3849_v34 = vld [vmem:[%s6634_s2 + $0x1e0] sm:$0xff] }
 0x4a5   : > { %v1743_v54 = vadd.f32 %v4439_v53, %v6007_v43  ;;  %v1737_v55 = vpop.f32.mrb[53].mxu1  ;;  %4716 = vmatprep.subr.bf16.mxu0 %v4715_v36 }
 0x4a6   : > { %v1738_v56 = vadd.f32 %v6007_v43, %v1737_v55 }
 0x4a8   : > { %5025 = vtanh.f32 %v1738_v56  ;;  %4718 = vmatpush3.bf16.msra.mxu0 %v4715_v36  ;;  %v4735_v36 = vpack.c.bf16 %v3850_v35, %v3849_v34 }
 0x4a9   : > { %5027 = vtanh.f32 %v1743_v54  ;;  %v5022_v57 = vpop.eup %5021  ;;  %4720 = vmatprep.subr.bf16.mxu0 %v4719_v39 }
 0x4aa   : > { %v5024_v58 = vpop.eup %5023  ;;  %4474 = vmatprep.mubr.msk.f32.mxu0 %vm933_vm0, %v5022_v57 }
 0x4ab   : > { %4475 = vmatmul.mubr.msk.f32.gmra.mrb[66].mxu0 %vm933_vm0, %v5024_v58 }
 0x4ac   : > { %v4442_v59 = vpop.f32.mrb[54].mxu1  ;;  %4722 = vmatpush3.bf16.msra.mxu0 %v4719_v39 }
 0x4ad   : > { %v1753_v60 = vadd.f32 %v4442_v59, %v6007_v43  ;;  %v1747_v61 = vpop.f32.mrb[55].mxu1 }
 0x4ae   : > { %v1748_v62 = vadd.f32 %v6007_v43, %v1747_v61 }
 0x4b0   : > { %5029 = vtanh.f32 %v1748_v62 }
 0x4b1   : > { %5031 = vtanh.f32 %v1753_v60 }
 0x4b2   : > { %v5026_v63 = vpop.eup %5025 }
 0x4b3   : > { %v5028_v0 = vpop.eup %5027  ;;  %4477 = vmatprep.mubr.msk.f32.mxu0 %vm933_vm0, %v5026_v63 }
 0x4b4   : > { %v4445_v1 = vpop.f32.mrb[56].mxu1  ;;  %4478 = vmatmul.mubr.msk.f32.gmra.mrb[68].mxu0 %vm933_vm0, %v5028_v0 }
 0x4b5   : > { %v1763_v2 = vadd.f32 %v4445_v1, %v6007_v43  ;;  %v1757_v3 = vpop.f32.mrb[57].mxu1 }
 0x4b6   : > { %v1758_v4 = vadd.f32 %v6007_v43, %v1757_v3 }
 0x4b8   : > { %5033 = vtanh.f32 %v1758_v4 }
 0x4b9   : > { %5035 = vtanh.f32 %v1763_v2 }
 0x4ba   : > { %v5030_v5 = vpop.eup %5029 }
 0x4bb   : > { %v5032_v6 = vpop.eup %5031  ;;  %4480 = vmatprep.mubr.msk.f32.mxu0 %vm933_vm0, %v5030_v5 }
 0x4bc   : > { %v4448_v7 = vpop.f32.mrb[58].mxu1  ;;  %4481 = vmatmul.mubr.msk.f32.gmra.mrb[70].mxu0 %vm933_vm0, %v5032_v6 }
 0x4bd   : > { %v1773_v8 = vadd.f32 %v4448_v7, %v6007_v43  ;;  %v1767_v9 = vpop.f32.mrb[59].mxu1 }
 0x4be   : > { %v1768_v10 = vadd.f32 %v6007_v43, %v1767_v9 }
 0x4c0   : > { %5037 = vtanh.f32 %v1768_v10 }
 0x4c1   : > { %5039 = vtanh.f32 %v1773_v8 }
 0x4c2   : > { %v5034_v11 = vpop.eup %5033 }
 0x4c3   : > { %v5036_v12 = vpop.eup %5035  ;;  %4483 = vmatprep.mubr.msk.f32.mxu0 %vm933_vm0, %v5034_v11 }
 0x4c4   : > { %v4451_v13 = vpop.f32.mrb[60].mxu1  ;;  %4484 = vmatmul.mubr.msk.f32.gmra.mrb[72].mxu0 %vm933_vm0, %v5036_v12 }
 0x4c5   : > { %v1783_v14 = vadd.f32 %v4451_v13, %v6007_v43  ;;  %v1777_v15 = vpop.f32.mrb[61].mxu1 }
 0x4c6   : > { %v1778_v16 = vadd.f32 %v6007_v43, %v1777_v15 }
 0x4c8   : > { %5041 = vtanh.f32 %v1778_v16 }
 0x4c9   : > { %5043 = vtanh.f32 %v1783_v14 }
 0x4ca   : > { %v5038_v17 = vpop.eup %5037 }
 0x4cb   : > { %v5040_v18 = vpop.eup %5039  ;;  %4486 = vmatprep.mubr.msk.f32.mxu0 %vm933_vm0, %v5038_v17 }
 0x4cc   : > { %v4454_v19 = vpop.f32.mrb[62].mxu1  ;;  %4487 = vmatmul.mubr.msk.f32.gmra.mrb[74].mxu0 %vm933_vm0, %v5040_v18 }
 0x4cd   : > { %v1793_v20 = vadd.f32 %v4454_v19, %v6007_v43  ;;  %v1787_v21 = vpop.f32.mrb[63].mxu1 }
 0x4ce   : > { %v1788_v22 = vadd.f32 %v6007_v43, %v1787_v21 }
 0x4d0   : > { %5045 = vtanh.f32 %v1788_v22 }
 0x4d1   : > { %5047 = vtanh.f32 %v1793_v20 }
 0x4d2   : > { %v5042_v23 = vpop.eup %5041 }
 0x4d3   : > { %v5044_v24 = vpop.eup %5043  ;;  %4489 = vmatprep.mubr.msk.f32.mxu0 %vm933_vm0, %v5042_v23 }
 0x4d4   : > { %4490 = vmatmul.mubr.msk.f32.gmra.mrb[76].mxu0 %vm933_vm0, %v5044_v24  ;;  %v3826_v24 = vld [vmem:[%s6634_s2 + $0x1b0] sm:$0xff] }
 0x4da   : > { %v5046_v25 = vpop.eup %5045 }
 0x4db   : > { %v5048_v27 = vpop.eup %5047  ;;  %4492 = vmatprep.mubr.msk.f32.mxu0 %vm933_vm0, %v5046_v25  ;;  %v3827_v25 = vld [vmem:[%s6634_s2 + $0x1b8] sm:$0xff] }
 0x4dc   : > { %4493 = vmatmul.mubr.msk.f32.gmra.mrb[78].mxu0 %vm933_vm0, %v5048_v27  ;;  %v4723_v27 = vpack.c.bf16 %v3827_v25, %v3826_v24  ;;  %v4865_v24 = vld [vmem:[%s6635_s3] ss:$16 sps:$4 sm:$0xff]   ;;  %v4867_v25 = vld [vmem:[%s6635_s3 + $0x4] ss:$16 sps:$4 sm:$0xff]  }
 0x4de   : > { %4724 = vmatprep.subr.bf16.mxu0 %v4723_v27 }
 0x4df   : > { %4726 = vmatpush3.bf16.msra.mxu0 %v4723_v27  ;;  %v4870_v27 = vld [vmem:[%s6635_s3 + $0xc] ss:$16 sps:$4 sm:$0xff]  }
 0x4e0   : > { %2854 = vmatprep.subr.bf16.mxu0 %v4867_v25  ;;  %v5497_v25 = vmov 0  }
 0x576   : > { %v4473_v41 = vpop.f32.mrb[64].mxu0 }
 0x577   : > { %v1946_v42 = vadd.f32 %v4473_v41, %v6068_v40  ;;  %v1940_v43 = vpop.f32.mrb[65].mxu0 }
 0x578   : > { %v1941_v26 = vadd.f32 %v6068_v40, %v1940_v43 }
 0x57a   : > { %5049 = vtanh.f32 %v1941_v26 }
 0x57b   : > { %5051 = vtanh.f32 %v1946_v42 }
 0x57e   : > { %v4476_v44 = vpop.f32.mrb[66].mxu0 }
 0x57f   : > { %v1956_v45 = vadd.f32 %v4476_v44, %v6068_v40  ;;  %v1950_v46 = vpop.f32.mrb[67].mxu0 }
 0x580   : > { %v1951_v47 = vadd.f32 %v6068_v40, %v1950_v46 }
 0x582   : > { %5053 = vtanh.f32 %v1951_v47 }
 0x583   : > { %5055 = vtanh.f32 %v1956_v45 }
 0x584   : > { %v5050_v48 = vpop.eup %5049 }
 0x585   : > { %v5052_v49 = vpop.eup %5051  ;;  %4511 = vmatprep.mubr.msk.f32.mxu1 %vm933_vm0, %v5050_v48 }
 0x586   : > { %4512 = vmatmul.mubr.msk.f32.vlgmr.msra.gmra.mrb[64].mxu1 %vm933_vm0, %v5052_v49 }
 0x587   : > { %v4479_v50 = vpop.f32.mrb[68].mxu0  ;;  %4730 = vmatpush3.bf16.msra.mxu1 %v4727_v31 }
 0x588   : > { %v1966_v51 = vadd.f32 %v4479_v50, %v6068_v40  ;;  %v1960_v52 = vpop.f32.mrb[69].mxu0  ;;  %4732 = vmatprep.subr.bf16.mxu1 %v4731_v33 }
 0x589   : > { %v1961_v53 = vadd.f32 %v6068_v40, %v1960_v52 }
 0x58b   : > { %5057 = vtanh.f32 %v1961_v53  ;;  %4734 = vmatpush3.bf16.msra.mxu1 %v4731_v33 }
 0x58c   : > { %5059 = vtanh.f32 %v1966_v51  ;;  %v5054_v54 = vpop.eup %5053  ;;  %4736 = vmatprep.subr.bf16.mxu1 %v4735_v36 }
 0x58d   : > { %v5056_v55 = vpop.eup %5055  ;;  %4514 = vmatprep.mubr.msk.f32.mxu1 %vm933_vm0, %v5054_v54 }
 0x58e   : > { %4515 = vmatmul.mubr.msk.f32.gmra.mrb[66].mxu1 %vm933_vm0, %v5056_v55 }
 0x58f   : > { %v4482_v56 = vpop.f32.mrb[70].mxu0  ;;  %4738 = vmatpush3.bf16.msra.mxu1 %v4735_v36 }
 0x590   : > { %v1976_v57 = vadd.f32 %v4482_v56, %v6068_v40  ;;  %v1970_v58 = vpop.f32.mrb[71].mxu0 }
 0x591   : > { %v1971_v59 = vadd.f32 %v6068_v40, %v1970_v58 }
 0x593   : > { %5061 = vtanh.f32 %v1971_v59 }
 0x594   : > { %5063 = vtanh.f32 %v1976_v57 }
 0x595   : > { %v5058_v60 = vpop.eup %5057 }
 0x596   : > { %v5060_v61 = vpop.eup %5059  ;;  %4517 = vmatprep.mubr.msk.f32.mxu1 %vm933_vm0, %v5058_v60 }
 0x597   : > { %v4485_v62 = vpop.f32.mrb[72].mxu0  ;;  %4518 = vmatmul.mubr.msk.f32.gmra.mrb[68].mxu1 %vm933_vm0, %v5060_v61 }
 0x598   : > { %v1986_v63 = vadd.f32 %v4485_v62, %v6068_v40  ;;  %v1980_v0 = vpop.f32.mrb[73].mxu0 }
 0x599   : > { %v1981_v1 = vadd.f32 %v6068_v40, %v1980_v0 }
 0x59b   : > { %5065 = vtanh.f32 %v1981_v1 }
 0x59c   : > { %5067 = vtanh.f32 %v1986_v63 }
 0x59d   : > { %v5062_v2 = vpop.eup %5061 }
 0x59e   : > { %v5064_v3 = vpop.eup %5063  ;;  %4520 = vmatprep.mubr.msk.f32.mxu1 %vm933_vm0, %v5062_v2 }
 0x59f   : > { %v4488_v4 = vpop.f32.mrb[74].mxu0  ;;  %4521 = vmatmul.mubr.msk.f32.gmra.mrb[70].mxu1 %vm933_vm0, %v5064_v3 }
 0x5a0   : > { %v1996_v5 = vadd.f32 %v4488_v4, %v6068_v40  ;;  %v1990_v6 = vpop.f32.mrb[75].mxu0 }
 0x5a1   : > { %v1991_v7 = vadd.f32 %v6068_v40, %v1990_v6 }
 0x5a3   : > { %5069 = vtanh.f32 %v1991_v7 }
 0x5a4   : > { %5071 = vtanh.f32 %v1996_v5 }
 0x5a5   : > { %v5066_v8 = vpop.eup %5065 }
 0x5a6   : > { %v5068_v9 = vpop.eup %5067  ;;  %4523 = vmatprep.mubr.msk.f32.mxu1 %vm933_vm0, %v5066_v8 }
 0x5a7   : > { %v4491_v10 = vpop.f32.mrb[76].mxu0  ;;  %4524 = vmatmul.mubr.msk.f32.gmra.mrb[72].mxu1 %vm933_vm0, %v5068_v9 }
 0x5a8   : > { %v2006_v11 = vadd.f32 %v4491_v10, %v6068_v40  ;;  %v2000_v12 = vpop.f32.mrb[77].mxu0 }
 0x5a9   : > { %v2001_v13 = vadd.f32 %v6068_v40, %v2000_v12 }
 0x5ab   : > { %5073 = vtanh.f32 %v2001_v13 }
 0x5ac   : > { %5075 = vtanh.f32 %v2006_v11 }
 0x5ad   : > { %v5070_v14 = vpop.eup %5069 }
 0x5ae   : > { %v5072_v15 = vpop.eup %5071  ;;  %4526 = vmatprep.mubr.msk.f32.mxu1 %vm933_vm0, %v5070_v14 }
 0x5af   : > { %v4494_v16 = vpop.f32.mrb[78].mxu0  ;;  %4527 = vmatmul.mubr.msk.f32.gmra.mrb[74].mxu1 %vm933_vm0, %v5072_v15 }
 0x5b0   : > { %v2016_v17 = vadd.f32 %v4494_v16, %v6068_v40  ;;  %v2010_v18 = vpop.f32.mrb[79].mxu0 }
 0x5b1   : > { %v2011_v19 = vadd.f32 %v6068_v40, %v2010_v18 }
 0x5b3   : > { %5077 = vtanh.f32 %v2011_v19 }
 0x5b4   : > { %5079 = vtanh.f32 %v2016_v17 }
 0x5b5   : > { %v5074_v20 = vpop.eup %5073 }
 0x5b6   : > { %v5076_v21 = vpop.eup %5075  ;;  %4529 = vmatprep.mubr.msk.f32.mxu1 %vm933_vm0, %v5074_v20 }
 0x5b7   : > { %4530 = vmatmul.mubr.msk.f32.gmra.mrb[76].mxu1 %vm933_vm0, %v5076_v21  ;;  %v3851_v21 = vld [vmem:[%s6634_s2 + $0x1f0] sm:$0xff] }
 0x5bd   : > { %v5078_v22 = vpop.eup %5077 }
 0x5be   : > { %v5080_v23 = vpop.eup %5079  ;;  %4532 = vmatprep.mubr.msk.f32.mxu1 %vm933_vm0, %v5078_v22  ;;  %v3852_v22 = vld [vmem:[%s6634_s2 + $0x1f8] sm:$0xff] }
 0x5bf   : > { %4533 = vmatmul.mubr.msk.f32.gmra.mrb[78].mxu1 %vm933_vm0, %v5080_v23  ;;  %v4739_v23 = vpack.c.bf16 %v3852_v22, %v3851_v21  ;;  %v4885_v21 = vld [vmem:[%s6635_s3 + $0x64] ss:$16 sps:$4 sm:$0xff]   ;;  %v4888_v22 = vld [vmem:[%s6635_s3 + $0x6c] ss:$16 sps:$4 sm:$0xff]  }
 0x5c1   : > { %4740 = vmatprep.subr.bf16.mxu1 %v4739_v23 }
 0x5c2   : > { %4742 = vmatpush3.bf16.msra.mxu1 %v4739_v23  ;;  %v4883_v23 = vld [vmem:[%s6635_s3 + $0x60] ss:$16 sps:$4 sm:$0xff]  }
 0x5c3   : > { %2967 = vmatprep.subr.bf16.mxu1 %v4870_v27  ;;  %v6259_v27 = vld [vmem:[%s6636_s4 + $0x8] ss:$0 sm:$0xff] }
 0x659   : > { %v4513_v38 = vpop.f32.mrb[64].mxu1 }
 0x65a   : > { %v2169_v39 = vadd.f32 %v4513_v38, %v6129_v37  ;;  %v2163_v40 = vpop.f32.mrb[65].mxu1 }
 0x65b   : > { %v2164_v41 = vadd.f32 %v6129_v37, %v2163_v40 }
 0x65d   : > { %5081 = vtanh.f32 %v2164_v41  ;;  %v4876_v41 = vld [vmem:[%s6635_s3 + $0x2c] ss:$16 sps:$4 sm:$0xff]  }
 0x65e   : > { %5083 = vtanh.f32 %v2169_v39  ;;  %v4868_v39 = vld [vmem:[%s6635_s3 + $0x8] ss:$16 sps:$4 sm:$0xff]  }
 0x661   : > { %v4516_v42 = vpop.f32.mrb[66].mxu1 }
 0x662   : > { %v2179_v43 = vadd.f32 %v4516_v42, %v6129_v37  ;;  %v2173_v26 = vpop.f32.mrb[67].mxu1 }
 0x663   : > { %v2174_v44 = vadd.f32 %v6129_v37, %v2173_v26 }
 0x665   : > { %5085 = vtanh.f32 %v2174_v44 }
 0x666   : > { %5087 = vtanh.f32 %v2179_v43 }
 0x667   : > { %v5082_v45 = vpop.eup %5081 }
 0x668   : > { %v5084_v46 = vpop.eup %5083  ;;  %4551 = vmatprep.mubr.msk.f32.mxu0 %vm933_vm0, %v5082_v45  ;;  %v4874_v45 = vld [vmem:[%s6635_s3 + $0x28] ss:$16 sps:$4 sm:$0xff]  }
 0x669   : > { %4552 = vmatmul.mubr.msk.f32.vlgmr.msra.gmra.mrb[80].mxu0 %vm933_vm0, %v5084_v46 }
 0x66a   : > { %v4519_v47 = vpop.f32.mrb[68].mxu1  ;;  %2855 = vmatpush1.bf16.msra.mxu0 %v4865_v24  ;;  %v4886_v24 = vld [vmem:[%s6635_s3 + $0x68] ss:$16 sps:$4 sm:$0xff]  }
 0x66b   : > { %v2189_v48 = vadd.f32 %v4519_v47, %v6129_v37  ;;  %v2183_v49 = vpop.f32.mrb[69].mxu1  ;;  %2856 = vmatprep.subr.bf16.mxu0 %v4873_v28 }
 0x66c   : > { %v2184_v50 = vadd.f32 %v6129_v37, %v2183_v49 }
 0x66e   : > { %5089 = vtanh.f32 %v2184_v50  ;;  %2857 = vmatpush1.bf16.msra.mxu0 %v4871_v29 }
 0x66f   : > { %5091 = vtanh.f32 %v2189_v48  ;;  %v5086_v51 = vpop.eup %5085 }
 0x670   : > { %v5088_v52 = vpop.eup %5087  ;;  %4554 = vmatprep.mubr.msk.f32.mxu0 %vm933_vm0, %v5086_v51 }
 0x671   : > { %4555 = vmatmul.mubr.msk.f32.gmra.mrb[82].mxu0 %vm933_vm0, %v5088_v52 }
 0x672   : > { %v4522_v53 = vpop.f32.mrb[70].mxu1 }
 0x673   : > { %v2199_v54 = vadd.f32 %v4522_v53, %v6129_v37  ;;  %v2193_v55 = vpop.f32.mrb[71].mxu1 }
 0x674   : > { %v2194_v56 = vadd.f32 %v6129_v37, %v2193_v55 }
 0x676   : > { %5093 = vtanh.f32 %v2194_v56 }
 0x677   : > { %5095 = vtanh.f32 %v2199_v54 }
 0x678   : > { %v5090_v57 = vpop.eup %5089 }
 0x679   : > { %v5092_v58 = vpop.eup %5091  ;;  %4557 = vmatprep.mubr.msk.f32.mxu0 %vm933_vm0, %v5090_v57 }
 0x67a   : > { %v4525_v59 = vpop.f32.mrb[72].mxu1  ;;  %4558 = vmatmul.mubr.msk.f32.gmra.mrb[84].mxu0 %vm933_vm0, %v5092_v58 }
 0x67b   : > { %v2209_v60 = vadd.f32 %v4525_v59, %v6129_v37  ;;  %v2203_v61 = vpop.f32.mrb[73].mxu1 }
 0x67c   : > { %v2204_v62 = vadd.f32 %v6129_v37, %v2203_v61 }
 0x67e   : > { %5097 = vtanh.f32 %v2204_v62 }
 0x67f   : > { %5099 = vtanh.f32 %v2209_v60 }
 0x680   : > { %v5094_v63 = vpop.eup %5093 }
 0x681   : > { %v5096_v0 = vpop.eup %5095  ;;  %4560 = vmatprep.mubr.msk.f32.mxu0 %vm933_vm0, %v5094_v63 }
 0x682   : > { %v4528_v1 = vpop.f32.mrb[74].mxu1  ;;  %4561 = vmatmul.mubr.msk.f32.gmra.mrb[86].mxu0 %vm933_vm0, %v5096_v0 }
 0x683   : > { %v2219_v2 = vadd.f32 %v4528_v1, %v6129_v37  ;;  %v2213_v3 = vpop.f32.mrb[75].mxu1 }
 0x684   : > { %v2214_v4 = vadd.f32 %v6129_v37, %v2213_v3 }
 0x686   : > { %5101 = vtanh.f32 %v2214_v4 }
 0x687   : > { %5103 = vtanh.f32 %v2219_v2 }
 0x688   : > { %v5098_v5 = vpop.eup %5097 }
 0x689   : > { %v5100_v6 = vpop.eup %5099  ;;  %4563 = vmatprep.mubr.msk.f32.mxu0 %vm933_vm0, %v5098_v5 }
 0x68a   : > { %v4531_v7 = vpop.f32.mrb[76].mxu1  ;;  %4564 = vmatmul.mubr.msk.f32.gmra.mrb[88].mxu0 %vm933_vm0, %v5100_v6 }
 0x68b   : > { %v2229_v8 = vadd.f32 %v4531_v7, %v6129_v37  ;;  %v2223_v9 = vpop.f32.mrb[77].mxu1 }
 0x68c   : > { %v2224_v10 = vadd.f32 %v6129_v37, %v2223_v9 }
 0x68e   : > { %5105 = vtanh.f32 %v2224_v10 }
 0x68f   : > { %5107 = vtanh.f32 %v2229_v8 }
 0x690   : > { %v5102_v11 = vpop.eup %5101 }
 0x691   : > { %v5104_v12 = vpop.eup %5103  ;;  %4566 = vmatprep.mubr.msk.f32.mxu0 %vm933_vm0, %v5102_v11 }
 0x692   : > { %v4534_v13 = vpop.f32.mrb[78].mxu1  ;;  %4567 = vmatmul.mubr.msk.f32.gmra.mrb[90].mxu0 %vm933_vm0, %v5104_v12 }
 0x693   : > { %v2239_v14 = vadd.f32 %v4534_v13, %v6129_v37  ;;  %v2233_v15 = vpop.f32.mrb[79].mxu1 }
 0x694   : > { %v2234_v16 = vadd.f32 %v6129_v37, %v2233_v15 }
 0x696   : > { %5109 = vtanh.f32 %v2234_v16 }
 0x697   : > { %5111 = vtanh.f32 %v2239_v14 }
 0x698   : > { %v5106_v17 = vpop.eup %5105 }
 0x699   : > { %v5108_v18 = vpop.eup %5107  ;;  %4569 = vmatprep.mubr.msk.f32.mxu0 %vm933_vm0, %v5106_v17  ;;  %v4877_v17 = vld [vmem:[%s6635_s3 + $0x40] ss:$16 sps:$4 sm:$0xff]  }
 0x69a   : > { %4570 = vmatmul.mubr.msk.f32.gmra.mrb[92].mxu0 %vm933_vm0, %v5108_v18  ;;  %v4879_v18 = vld [vmem:[%s6635_s3 + $0x44] ss:$16 sps:$4 sm:$0xff]  }
 0x69b   : > { %2858 = vmatprep.subr.bf16.mxu0 %v4879_v18 }
 0x69c   : > { %2859 = vmatpush1.bf16.msra.mxu0 %v4877_v17 }
 0x69d   : > { %2860 = vmatprep.subr.bf16.mxu0 %v4885_v21 }
 0x6a0   : > { %v5110_v19 = vpop.eup %5109  ;;  %2861 = vmatpush1.bf16.msra.mxu0 %v4883_v23  ;;  %v2728_v23 = vld [vmem:[%s6637_s5] sm:$0xf] }
 0x6a1   : > { %v5112_v20 = vpop.eup %5111  ;;  %4572 = vmatprep.mubr.msk.f32.mxu0 %vm933_vm0, %v5110_v19  ;;  %v4880_v19 = vld [vmem:[%s6635_s3 + $0x48] ss:$16 sps:$4 sm:$0xff]  }
 0x6a2   : > { %4573 = vmatmul.mubr.msk.f32.gmra.mrb[94].mxu0 %vm933_vm0, %v5112_v20  ;;  %v4882_v20 = vld [vmem:[%s6635_s3 + $0x4c] ss:$16 sps:$4 sm:$0xff]  }
 0x6a3   : > { %2886 = vmatprep.mubr.bf16.mxu0 %v5497_v25 }
 0x73c   : > { %v4553_v31 = vpop.f32.mrb[80].mxu0 }
 0x73d   : > { %v2392_v32 = vadd.f32 %v4553_v31, %v6187_v30  ;;  %v2386_v33 = vpop.f32.mrb[81].mxu0 }
 0x73e   : > { %v2387_v34 = vadd.f32 %v6187_v30, %v2386_v33 }
 0x740   : > { %5113 = vtanh.f32 %v2387_v34 }
 0x741   : > { %5115 = vtanh.f32 %v2392_v32 }
 0x744   : > { %v4556_v35 = vpop.f32.mrb[82].mxu0 }
 0x745   : > { %v2402_v36 = vadd.f32 %v4556_v35, %v6187_v30  ;;  %v2396_v37 = vpop.f32.mrb[83].mxu0 }
 0x746   : > { %v2397_v38 = vadd.f32 %v6187_v30, %v2396_v37 }
 0x748   : > { %5117 = vtanh.f32 %v2397_v38 }
 0x749   : > { %5119 = vtanh.f32 %v2402_v36 }
 0x74a   : > { %v5114_v40 = vpop.eup %5113 }
 0x74b   : > { %v5116_v42 = vpop.eup %5115  ;;  %4591 = vmatprep.mubr.msk.f32.mxu1 %vm933_vm0, %v5114_v40 }
 0x74c   : > { %4592 = vmatmul.mubr.msk.f32.vlgmr.msra.gmra.mrb[80].mxu1 %vm933_vm0, %v5116_v42 }
 0x74d   : > { %v4559_v43 = vpop.f32.mrb[84].mxu0  ;;  %2968 = vmatpush1.bf16.msra.mxu1 %v4868_v39 }
 0x74e   : > { %v2412_v26 = vadd.f32 %v4559_v43, %v6187_v30  ;;  %v2406_v44 = vpop.f32.mrb[85].mxu0  ;;  %2969 = vmatprep.subr.bf16.mxu1 %v4876_v41 }
 0x74f   : > { %v2407_v46 = vadd.f32 %v6187_v30, %v2406_v44 }
 0x751   : > { %5121 = vtanh.f32 %v2407_v46  ;;  %2970 = vmatpush1.bf16.msra.mxu1 %v4874_v45 }
 0x752   : > { %5123 = vtanh.f32 %v2412_v26  ;;  %v5118_v47 = vpop.eup %5117  ;;  %2971 = vmatprep.subr.bf16.mxu1 %v4882_v20 }
 0x753   : > { %v5120_v48 = vpop.eup %5119  ;;  %4594 = vmatprep.mubr.msk.f32.mxu1 %vm933_vm0, %v5118_v47 }
 0x754   : > { %4595 = vmatmul.mubr.msk.f32.gmra.mrb[82].mxu1 %vm933_vm0, %v5120_v48 }
 0x755   : > { %v4562_v49 = vpop.f32.mrb[86].mxu0  ;;  %2972 = vmatpush1.bf16.msra.mxu1 %v4880_v19  ;;  %v2730_v19 = vlaneseq }
 0x756   : > { %v2422_v50 = vadd.f32 %v4562_v49, %v6187_v30  ;;  %v2416_v51 = vpop.f32.mrb[87].mxu0  ;;  %2973 = vmatprep.subr.bf16.mxu1 %v4888_v22 }
 0x757   : > { %v2417_v52 = vadd.f32 %v6187_v30, %v2416_v51  ;;  %v2731_v20 = vshrl.u32 %v2730_v19, 7 }
 0x759   : > { %5125 = vtanh.f32 %v2417_v52  ;;  %2974 = vmatpush1.bf16.msra.mxu1 %v4886_v24  ;;  %v2732_v21 = vsub.s32 0, %v2731_v20  ;;  %v2740_v22 = vsub.s32 2, %v2731_v20  ;;  %v2736_v24 = vsub.s32 1, %v2731_v20 }
 0x75a   : > { %5127 = vtanh.f32 %v2422_v50 }
 0x75b   : > { %v5122_v53 = vpop.eup %5121 }
 0x75c   : > { %v5124_v54 = vpop.eup %5123  ;;  %4597 = vmatprep.mubr.msk.f32.mxu1 %vm933_vm0, %v5122_v53 }
 0x75d   : > { %v4565_v55 = vpop.f32.mrb[88].mxu0  ;;  %4598 = vmatmul.mubr.msk.f32.gmra.mrb[84].mxu1 %vm933_vm0, %v5124_v54 }
 0x75e   : > { %v2432_v56 = vadd.f32 %v4565_v55, %v6187_v30  ;;  %v2426_v57 = vpop.f32.mrb[89].mxu0 }
 0x75f   : > { %v2427_v58 = vadd.f32 %v6187_v30, %v2426_v57 }
 0x761   : > { %5129 = vtanh.f32 %v2427_v58 }
 0x762   : > { %5131 = vtanh.f32 %v2432_v56 }
 0x763   : > { %v5126_v59 = vpop.eup %5125 }
 0x764   : > { %v5128_v60 = vpop.eup %5127  ;;  %4600 = vmatprep.mubr.msk.f32.mxu1 %vm933_vm0, %v5126_v59 }
 0x765   : > { %v4568_v61 = vpop.f32.mrb[90].mxu0  ;;  %4601 = vmatmul.mubr.msk.f32.gmra.mrb[86].mxu1 %vm933_vm0, %v5128_v60 }
 0x766   : > { %v2442_v62 = vadd.f32 %v4568_v61, %v6187_v30  ;;  %v2436_v63 = vpop.f32.mrb[91].mxu0 }
 0x767   : > { %v2437_v0 = vadd.f32 %v6187_v30, %v2436_v63 }
 0x769   : > { %5133 = vtanh.f32 %v2437_v0 }
 0x76a   : > { %5135 = vtanh.f32 %v2442_v62 }
 0x76b   : > { %v5130_v1 = vpop.eup %5129 }
 0x76c   : > { %v5132_v2 = vpop.eup %5131  ;;  %4603 = vmatprep.mubr.msk.f32.mxu1 %vm933_vm0, %v5130_v1 }
 0x76d   : > { %v4571_v3 = vpop.f32.mrb[92].mxu0  ;;  %4604 = vmatmul.mubr.msk.f32.gmra.mrb[88].mxu1 %vm933_vm0, %v5132_v2 }
 0x76e   : > { %v2452_v4 = vadd.f32 %v4571_v3, %v6187_v30  ;;  %v2446_v5 = vpop.f32.mrb[93].mxu0 }
 0x76f   : > { %v2447_v6 = vadd.f32 %v6187_v30, %v2446_v5 }
 0x771   : > { %5137 = vtanh.f32 %v2447_v6 }
 0x772   : > { %5139 = vtanh.f32 %v2452_v4 }
 0x773   : > { %v5134_v7 = vpop.eup %5133 }
 0x774   : > { %v5136_v8 = vpop.eup %5135  ;;  %4606 = vmatprep.mubr.msk.f32.mxu1 %vm933_vm0, %v5134_v7 }
 0x775   : > { %v4574_v9 = vpop.f32.mrb[94].mxu0  ;;  %4607 = vmatmul.mubr.msk.f32.gmra.mrb[90].mxu1 %vm933_vm0, %v5136_v8 }
 0x776   : > { %v2462_v10 = vadd.f32 %v4574_v9, %v6187_v30  ;;  %v2456_v11 = vpop.f32.mrb[95].mxu0 }
 0x777   : > { %v2457_v12 = vadd.f32 %v6187_v30, %v2456_v11 }
 0x779   : > { %5141 = vtanh.f32 %v2457_v12 }
 0x77a   : > { %5143 = vtanh.f32 %v2462_v10 }
 0x77b   : > { %v5138_v13 = vpop.eup %5137 }
 0x77c   : > { %v5140_v14 = vpop.eup %5139  ;;  %4609 = vmatprep.mubr.msk.f32.mxu1 %vm933_vm0, %v5138_v13 }
 0x77d   : > { %4610 = vmatmul.mubr.msk.f32.gmra.mrb[92].mxu1 %vm933_vm0, %v5140_v14 }
 0x783   : > { %v5142_v15 = vpop.eup %5141 }
 0x784   : > { %v5144_v16 = vpop.eup %5143  ;;  %4612 = vmatprep.mubr.msk.f32.mxu1 %vm933_vm0, %v5142_v15 }
 0x785   : > { %4613 = vmatmul.mubr.msk.f32.gmra.mrb[94].mxu1 %vm933_vm0, %v5144_v16 }
 0x786   : > { %2999 = vmatprep.mubr.bf16.mxu1 %v5497_v25 }
 0x81f   : > { %v4593_v28 = vpop.f32.mrb[80].mxu1 }
 0x820   : > { %v2615_v29 = vadd.f32 %v4593_v28, %v6259_v27  ;;  %v2609_v30 = vpop.f32.mrb[81].mxu1  ;;  %v6310_v28 = vrot.slane %v2728_v23, %v2732_v21 }
 0x821   : > { %v2610_v31 = vadd.f32 %v6259_v27, %v2609_v30 }
 0x822   : > { %5145 = vtanh.f32 %v2615_v29  ;;  %v6314_v29 = vrot.slane %v2728_v23, %v2736_v24 }
 0x823   : > { %5147 = vtanh.f32 %v2610_v31 }
 0x827   : > { %v4596_v32 = vpop.f32.mrb[82].mxu1 }
 0x828   : > { %v2625_v33 = vadd.f32 %v4596_v32, %v6259_v27  ;;  %v2619_v34 = vpop.f32.mrb[83].mxu1 }
 0x829   : > { %v2620_v35 = vadd.f32 %v6259_v27, %v2619_v34 }
 0x82a   : > { %5149 = vtanh.f32 %v2625_v33 }
 0x82b   : > { %5151 = vtanh.f32 %v2620_v35 }
 0x82c   : > { %v5146_v36 = vpop.eup %5145 }
 0x82d   : > { %v5148_v37 = vpop.eup %5147 }
 0x82e   : > { %v2704_v38 = vpack.c.bf16 %v5146_v36, %v5148_v37 }
 0x830   : > { %v4599_v39 = vpop.f32.mrb[84].mxu1  ;;  %3886 = vmatmul.mubr.msk.bf16.vlgmr.msra.gmra.mrb[96].mxu0 %vm933_vm0, %v2704_v38  ;;  %3894 = vmatmul.mubr.msk.bf16.vlgmr.msra.gmra.mrb[96].mxu1 %vm933_vm0, %v2704_v38 }
 0x831   : > { %v2635_v40 = vadd.f32 %v4599_v39, %v6259_v27  ;;  %v2629_v41 = vpop.f32.mrb[85].mxu1  ;;  %2896 = vmatprep.mubr.bf16.mxu0 %v5497_v25  ;;  %3009 = vmatprep.mubr.bf16.mxu1 %v5497_v25 }
 0x832   : > { %v2630_v42 = vadd.f32 %v6259_v27, %v2629_v41 }
 0x833   : > { %5153 = vtanh.f32 %v2635_v40 }
 0x834   : > { %5155 = vtanh.f32 %v2630_v42  ;;  %v5150_v43 = vpop.eup %5149 }
 0x835   : > { %v5152_v26 = vpop.eup %5151 }
 0x836   : > { %v2705_v44 = vpack.c.bf16 %v5150_v43, %v5152_v26 }
 0x838   : > { %v4602_v45 = vpop.f32.mrb[86].mxu1  ;;  %3887 = vmatmul.mubr.msk.bf16.gmra.mrb[100].mxu0 %vm933_vm0, %v2705_v44  ;;  %3895 = vmatmul.mubr.msk.bf16.gmra.mrb[100].mxu1 %vm933_vm0, %v2705_v44 }
 0x839   : > { %v2645_v46 = vadd.f32 %v4602_v45, %v6259_v27  ;;  %v2639_v47 = vpop.f32.mrb[87].mxu1  ;;  %2906 = vmatprep.mubr.bf16.mxu0 %v5497_v25  ;;  %3019 = vmatprep.mubr.bf16.mxu1 %v5497_v25 }
 0x83a   : > { %v2640_v48 = vadd.f32 %v6259_v27, %v2639_v47 }
 0x83b   : > { %5157 = vtanh.f32 %v2645_v46 }
 0x83c   : > { %5159 = vtanh.f32 %v2640_v48 }
 0x83d   : > { %v5154_v49 = vpop.eup %5153 }
 0x83e   : > { %v5156_v50 = vpop.eup %5155 }
 0x83f   : > { %v2706_v51 = vpack.c.bf16 %v5154_v49, %v5156_v50 }
 0x840   : > { %v4605_v52 = vpop.f32.mrb[88].mxu1 }
 0x841   : > { %v2655_v53 = vadd.f32 %v4605_v52, %v6259_v27  ;;  %v2649_v54 = vpop.f32.mrb[89].mxu1  ;;  %3888 = vmatmul.mubr.msk.bf16.gmra.mrb[104].mxu0 %vm933_vm0, %v2706_v51  ;;  %3896 = vmatmul.mubr.msk.bf16.gmra.mrb[104].mxu1 %vm933_vm0, %v2706_v51 }
 0x842   : > { %v2650_v55 = vadd.f32 %v6259_v27, %v2649_v54  ;;  %2916 = vmatprep.mubr.bf16.mxu0 %v5497_v25  ;;  %3029 = vmatprep.mubr.bf16.mxu1 %v5497_v25 }
 0x843   : > { %5161 = vtanh.f32 %v2655_v53 }
 0x844   : > { %5163 = vtanh.f32 %v2650_v55 }
 0x845   : > { %v5158_v56 = vpop.eup %5157 }
 0x846   : > { %v5160_v57 = vpop.eup %5159 }
 0x847   : > { %v2707_v58 = vpack.c.bf16 %v5158_v56, %v5160_v57 }
 0x848   : > { %v4608_v59 = vpop.f32.mrb[90].mxu1 }
 0x849   : > { %v2665_v60 = vadd.f32 %v4608_v59, %v6259_v27  ;;  %v2659_v61 = vpop.f32.mrb[91].mxu1  ;;  %3889 = vmatmul.mubr.msk.bf16.gmra.mrb[108].mxu0 %vm933_vm0, %v2707_v58  ;;  %3897 = vmatmul.mubr.msk.bf16.gmra.mrb[108].mxu1 %vm933_vm0, %v2707_v58 }
 0x84a   : > { %v2660_v62 = vadd.f32 %v6259_v27, %v2659_v61  ;;  %2926 = vmatprep.mubr.bf16.mxu0 %v5497_v25  ;;  %3039 = vmatprep.mubr.bf16.mxu1 %v5497_v25 }
 0x84b   : > { %5165 = vtanh.f32 %v2665_v60 }
 0x84c   : > { %5167 = vtanh.f32 %v2660_v62 }
 0x84d   : > { %v5162_v63 = vpop.eup %5161 }
 0x84e   : > { %v5164_v0 = vpop.eup %5163 }
 0x84f   : > { %v2708_v1 = vpack.c.bf16 %v5162_v63, %v5164_v0 }
 0x850   : > { %v4611_v2 = vpop.f32.mrb[92].mxu1 }
 0x851   : > { %v2675_v3 = vadd.f32 %v4611_v2, %v6259_v27  ;;  %v2669_v4 = vpop.f32.mrb[93].mxu1  ;;  %3890 = vmatmul.mubr.msk.bf16.gmra.mrb[112].mxu0 %vm933_vm0, %v2708_v1  ;;  %3898 = vmatmul.mubr.msk.bf16.gmra.mrb[112].mxu1 %vm933_vm0, %v2708_v1 }
 0x852   : > { %v2670_v5 = vadd.f32 %v6259_v27, %v2669_v4  ;;  %2936 = vmatprep.mubr.bf16.mxu0 %v5497_v25  ;;  %3049 = vmatprep.mubr.bf16.mxu1 %v5497_v25 }
 0x853   : > { %5169 = vtanh.f32 %v2675_v3 }
 0x854   : > { %5171 = vtanh.f32 %v2670_v5 }
 0x855   : > { %v5166_v6 = vpop.eup %5165 }
 0x856   : > { %v5168_v7 = vpop.eup %5167 }
 0x857   : > { %v2709_v8 = vpack.c.bf16 %v5166_v6, %v5168_v7 }
 0x858   : > { %v4614_v9 = vpop.f32.mrb[94].mxu1 }
 0x859   : > { %v2685_v10 = vadd.f32 %v4614_v9, %v6259_v27  ;;  %v2679_v11 = vpop.f32.mrb[95].mxu1  ;;  %3891 = vmatmul.mubr.msk.bf16.gmra.mrb[116].mxu0 %vm933_vm0, %v2709_v8  ;;  %3899 = vmatmul.mubr.msk.bf16.gmra.mrb[116].mxu1 %vm933_vm0, %v2709_v8 }
 0x85a   : > { %v2680_v12 = vadd.f32 %v6259_v27, %v2679_v11  ;;  %2946 = vmatprep.mubr.bf16.mxu0 %v5497_v25  ;;  %3059 = vmatprep.mubr.bf16.mxu1 %v5497_v25  ;;  %v2744_v27 = vsub.s32 3, %v2731_v20 }
 0x85b   : > { %5173 = vtanh.f32 %v2685_v10 }
 0x85c   : > { %5175 = vtanh.f32 %v2680_v12  ;;  %v6316_v30 = vrot.slane %v2728_v23, %v2744_v27 }
 0x85d   : > { %v5170_v13 = vpop.eup %5169 }
 0x85e   : > { %v5172_v14 = vpop.eup %5171 }
 0x85f   : > { %v2710_v15 = vpack.c.bf16 %v5170_v13, %v5172_v14 }
 0x861   : > { %3892 = vmatmul.mubr.msk.bf16.gmra.mrb[120].mxu0 %vm933_vm0, %v2710_v15  ;;  %3900 = vmatmul.mubr.msk.bf16.gmra.mrb[120].mxu1 %vm933_vm0, %v2710_v15 }
 0x862   : > { %2956 = vmatprep.mubr.bf16.mxu0 %v5497_v25  ;;  %3069 = vmatprep.mubr.bf16.mxu1 %v5497_v25  ;;  %v6312_v25 = vrot.slane %v2728_v23, %v2740_v22 }
 0x865   : > { %v5174_v16 = vpop.eup %5173 }
 0x866   : > { %v5176_v17 = vpop.eup %5175 }
 0x867   : > { %v2711_v18 = vpack.c.bf16 %v5174_v16, %v5176_v17 }
 0x869   : > { %3893 = vmatmul.mubr.msk.bf16.gmra.mrb[124].mxu0 %vm933_vm0, %v2711_v18  ;;  %3901 = vmatmul.mubr.msk.bf16.gmra.mrb[124].mxu1 %vm933_vm0, %v2711_v18 }
 0x903   : > { %v2888_v31 = vpop.f32.mrb[96].mxu0  ;;  %v3001_v32 = vpop.f32.mrb[96].mxu1 }
 0x904   : > { %v2889_v33 = vadd.f32 %v2888_v31, %v6310_v28  ;;  %v3002_v34 = vadd.f32 %v3001_v32, %v6312_v25  ;;  %v2890_v35 = vpop.f32.mrb[97].mxu0  ;;  %v3003_v36 = vpop.f32.mrb[97].mxu1 }
 0x905   : > { %v2891_v37 = vadd.f32 %v2890_v35, %v6314_v29  ;;  %v3004_v38 = vadd.f32 %v3003_v36, %v6316_v30  ;;  %v2892_v39 = vpop.f32.mrb[98].mxu0  ;;  %v3005_v40 = vpop.f32.mrb[98].mxu1 }
 0x906   : > { %v3902_v41 = vmul.f32 -1.442695, %v2889_v33  ;;  %v3904_v42 = vmul.f32 -1.442695, %v3002_v34  ;;  %v2893_v43 = vadd.f32 %v2892_v39, %v6310_v28  ;;  %v3006_v26 = vadd.f32 %v3005_v40, %v6312_v25  ;;  %v2894_v44 = vpop.f32.mrb[99].mxu0  ;;  %v3007_v45 = vpop.f32.mrb[99].mxu1 }
 0x907   : > { %v3903_v46 = vmul.f32 -1.442695, %v2891_v37  ;;  %v3905_v47 = vmul.f32 -1.442695, %v3004_v38  ;;  %v2895_v48 = vadd.f32 %v2894_v44, %v6314_v29  ;;  %v3008_v49 = vadd.f32 %v3007_v45, %v6316_v30 }
 0x908   : > { %5177 = vpow2.f32 %v3902_v41  ;;  %v3906_v50 = vmul.f32 -1.442695, %v2893_v43  ;;  %v3908_v51 = vmul.f32 -1.442695, %v3006_v26 }
 0x909   : > { %5179 = vpow2.f32 %v3904_v42  ;;  %v3907_v52 = vmul.f32 -1.442695, %v2895_v48  ;;  %v3909_v53 = vmul.f32 -1.442695, %v3008_v49 }
 0x90a   : > { %5181 = vpow2.f32 %v3903_v46 }
 0x90b   : > { %5183 = vpow2.f32 %v3905_v47  ;;  %v2898_v54 = vpop.f32.mrb[100].mxu0  ;;  %v3011_v55 = vpop.f32.mrb[100].mxu1 }
 0x90c   : > { %5185 = vpow2.f32 %v3906_v50  ;;  %v2899_v56 = vadd.f32 %v2898_v54, %v6310_v28  ;;  %v3012_v57 = vadd.f32 %v3011_v55, %v6312_v25  ;;  %v2900_v58 = vpop.f32.mrb[101].mxu0  ;;  %v3013_v59 = vpop.f32.mrb[101].mxu1 }
 0x90d   : > { %5187 = vpow2.f32 %v3908_v51  ;;  %v2901_v60 = vadd.f32 %v2900_v58, %v6314_v29  ;;  %v3014_v61 = vadd.f32 %v3013_v59, %v6316_v30  ;;  %v2902_v62 = vpop.f32.mrb[102].mxu0  ;;  %v3015_v63 = vpop.f32.mrb[102].mxu1 }
 0x90e   : > { %5189 = vpow2.f32 %v3907_v52  ;;  %v3910_v0 = vmul.f32 -1.442695, %v2899_v56  ;;  %v3912_v1 = vmul.f32 -1.442695, %v3012_v57  ;;  %v2903_v2 = vadd.f32 %v2902_v62, %v6310_v28  ;;  %v2904_v3 = vpop.f32.mrb[103].mxu0  ;;  %v3017_v4 = vpop.f32.mrb[103].mxu1 }
 0x90f   : > { %5191 = vpow2.f32 %v3909_v53  ;;  %v3911_v5 = vmul.f32 -1.442695, %v2901_v60  ;;  %v3913_v6 = vmul.f32 -1.442695, %v3014_v61  ;;  %v3016_v38 = vadd.f32 %v3015_v63, %v6312_v25 }
 0x910   : > { %5193 = vpow2.f32 %v3910_v0  ;;  %v3914_v7 = vmul.f32 -1.442695, %v2903_v2  ;;  %v2905_v41 = vadd.f32 %v2904_v3, %v6314_v29  ;;  %v3018_v44 = vadd.f32 %v3017_v4, %v6316_v30 }
 0x911   : > { %5195 = vpow2.f32 %v3912_v1  ;;  %v3916_v54 = vmul.f32 -1.442695, %v3016_v38 }
 0x912   : > { %v5178_v8 = vpop.eup %5177  ;;  %5197 = vpow2.f32 %v3911_v5  ;;  %v3915_v60 = vmul.f32 -1.442695, %v2905_v41  ;;  %v3917_v0 = vmul.f32 -1.442695, %v3018_v44 }
 0x913   : > { %v5180_v9 = vpop.eup %5179  ;;  %v3272_v10 = vadd.f32 1.0, %v5178_v8  ;;  %5199 = vpow2.f32 %v3913_v6 }
 0x914   : > { %v2908_v11 = vpop.f32.mrb[104].mxu0  ;;  %v3021_v12 = vpop.f32.mrb[104].mxu1  ;;  %v3274_v14 = vadd.f32 1.0, %v5180_v9  ;;  %5201 = vpow2.f32 %v3914_v7 }
 0x915   : > { %v5182_v13 = vpop.eup %5181  ;;  %v2910_v15 = vpop.f32.mrb[105].mxu0  ;;  %5203 = vrcp.f32 %v3272_v10  ;;  %v2909_v49 = vadd.f32 %v2908_v11, %v6310_v28  ;;  %v3022_v55 = vadd.f32 %v3021_v12, %v6312_v25 }
 0x916   : > { %v3023_v16 = vpop.f32.mrb[105].mxu1  ;;  %v5184_v17 = vpop.eup %5183  ;;  %v3273_v18 = vadd.f32 1.0, %v5182_v13  ;;  %5205 = vrcp.f32 %v3274_v14  ;;  %v2911_v61 = vadd.f32 %v2910_v15, %v6314_v29 }
 0x917   : > { %v2912_v19 = vpop.f32.mrb[106].mxu0  ;;  %v6331_v20 = vpop.f32.mrb[106].mxu1  ;;  %v3275_v22 = vadd.f32 1.0, %v5184_v17  ;;  %v3024_v1 = vadd.f32 %v3023_v16, %v6316_v30  ;;  %v3918_v3 = vmul.f32 -1.442695, %v2909_v49 }
 0x918   : > { %v5186_v21 = vpop.eup %5185  ;;  %v6333_v23 = vpop.f32.mrb[107].mxu0  ;;  %5207 = vrcp.f32 %v3273_v18  ;;  %v2913_v4 = vadd.f32 %v2912_v19, %v6310_v28  ;;  %v3920_v6 = vmul.f32 -1.442695, %v3022_v55  ;;  %v3026_v7 = vadd.f32 %v6331_v20, %v6312_v25 }
 0x919   : > { %v5188_v24 = vpop.eup %5187  ;;  %v3276_v27 = vadd.f32 1.0, %v5186_v21  ;;  %v6336_v31 = vpop.f32.mrb[107].mxu1  ;;  %5209 = vrcp.f32 %v3275_v22  ;;  %v3919_v9 = vmul.f32 -1.442695, %v2911_v61  ;;  %v2915_v10 = vadd.f32 %v6333_v23, %v6314_v29 }
 0x91a   : > { %v5190_v32 = vpop.eup %5189  ;;  %v3278_v33 = vadd.f32 1.0, %v5188_v24  ;;  %v3921_v14 = vmul.f32 -1.442695, %v3024_v1  ;;  %v3028_v15 = vadd.f32 %v6336_v31, %v6316_v30  ;;  %v3922_v19 = vmul.f32 -1.442695, %v2913_v4 }
 0x91b   : > { %v5192_v34 = vpop.eup %5191  ;;  %5211 = vrcp.f32 %v3276_v27  ;;  %v3277_v35 = vadd.f32 1.0, %v5190_v32  ;;  %v3924_v24 = vmul.f32 -1.442695, %v3026_v7 }
 0x91c   : > { %v5194_v36 = vpop.eup %5193  ;;  %5213 = vrcp.f32 %v3278_v33  ;;  %v3279_v37 = vadd.f32 1.0, %v5192_v34  ;;  %v2918_v42 = vpop.f32.mrb[108].mxu0  ;;  %v3923_v34 = vmul.f32 -1.442695, %v2915_v10 }
 0x91d   : > { %v5196_v39 = vpop.eup %5195  ;;  %5215 = vrcp.f32 %v3277_v35  ;;  %v3280_v40 = vadd.f32 1.0, %v5194_v36  ;;  %v3031_v45 = vpop.f32.mrb[108].mxu1  ;;  %v2919_v20 = vadd.f32 %v2918_v42, %v6310_v28  ;;  %v3925_v36 = vmul.f32 -1.442695, %v3028_v15 }
 0x91e   : > { %v5198_v43 = vpop.eup %5197  ;;  %5217 = vrcp.f32 %v3279_v37  ;;  %v3282_v26 = vadd.f32 1.0, %v5196_v39  ;;  %v6345_v46 = vpop.f32.mrb[109].mxu0  ;;  %v3032_v27 = vadd.f32 %v3031_v45, %v6312_v25 }
 0x91f   : > { %v5200_v47 = vpop.eup %5199  ;;  %5219 = vrcp.f32 %v3280_v40  ;;  %v3281_v48 = vadd.f32 1.0, %v5198_v43  ;;  %v6348_v50 = vpop.f32.mrb[109].mxu1  ;;  %v3926_v39 = vmul.f32 -1.442695, %v2919_v20 }
 0x920   : > { %v6350_v51 = vpop.f32.mrb[110].mxu0  ;;  %v5202_v52 = vpop.eup %5201  ;;  %5221 = vrcp.f32 %v3282_v26  ;;  %v3283_v53 = vadd.f32 1.0, %v5200_v47  ;;  %v3928_v41 = vmul.f32 -1.442695, %v3032_v27 }
 0x921   : > { %v6353_v56 = vpop.f32.mrb[110].mxu1  ;;  %v6355_v57 = vpop.f32.mrb[111].mxu0  ;;  %5223 = vrcp.f32 %v3281_v48  ;;  %v3284_v59 = vadd.f32 1.0, %v5202_v52 }
 0x922   : > { %v5204_v58 = vpop.eup %5203  ;;  %v6358_v62 = vpop.f32.mrb[111].mxu1  ;;  %5225 = vrcp.f32 %v3283_v53 }
 0x923   : > { %v5206_v63 = vpop.eup %5205  ;;  %3464 = vst [vmem:[%s6361_s28] sm:$0xff] %v5204_v58  ;;  %5227 = vrcp.f32 %v3284_v59 }
 0x924   : > { %v5208_v2 = vpop.eup %5207  ;;  %3466 = vst [vmem:[%s6361_s28 + $0x10] sm:$0xff] %v5206_v63  ;;  %5229 = vpow2.f32 %v3916_v54  ;;  %v6373_v11 = vpop.f32.mrb[112].mxu0  ;;  %v2921_v63 = vadd.f32 %v6345_v46, %v6314_v29 }
 0x925   : > { %v5210_v5 = vpop.eup %5209  ;;  %3465 = vst [vmem:[%s6361_s28 + $0x8] sm:$0xff] %v5208_v2  ;;  %5231 = vpow2.f32 %v3915_v60  ;;  %v6375_v12 = vpop.f32.mrb[112].mxu1 }
 0x926   : > { %v5212_v8 = vpop.eup %5211  ;;  %3467 = vst [vmem:[%s6361_s28 + $0x18] sm:$0xff] %v5210_v5  ;;  %5233 = vpow2.f32 %v3917_v0  ;;  %v6380_v16 = vpop.f32.mrb[113].mxu0  ;;  %v3927_v15 = vmul.f32 -1.442695, %v2921_v63 }
 0x927   : > { %v5214_v13 = vpop.eup %5213  ;;  %3468 = vst [vmem:[%s6361_s28 + $0x20] sm:$0xff] %v5212_v8  ;;  %v6382_v17 = vpop.f32.mrb[113].mxu1  ;;  %5235 = vpow2.f32 %v3918_v3  ;;  %v3034_v3 = vadd.f32 %v6348_v50, %v6316_v30 }
 0x928   : > { %v5216_v18 = vpop.eup %5215  ;;  %3470 = vst [vmem:[%s6361_s28 + $0x30] sm:$0xff] %v5214_v13  ;;  %v6386_v21 = vpop.f32.mrb[114].mxu0  ;;  %5237 = vpow2.f32 %v3920_v6 }
 0x929   : > { %v6388_v22 = vpop.f32.mrb[114].mxu1  ;;  %v5218_v23 = vpop.eup %5217  ;;  %3469 = vst [vmem:[%s6361_s28 + $0x28] sm:$0xff] %v5216_v18  ;;  %5239 = vpow2.f32 %v3919_v9  ;;  %v6431_v20 = vmul.f32 -1.442695, %v3034_v3 }
 0x92a   : > { %v6392_v31 = vpop.f32.mrb[115].mxu0  ;;  %v3047_v32 = vpop.f32.mrb[115].mxu1  ;;  %3471 = vst [vmem:[%s6361_s28 + $0x38] sm:$0xff] %v5218_v23  ;;  %5241 = vpow2.f32 %v3921_v14  ;;  %v2923_v23 = vadd.f32 %v6350_v51, %v6310_v28 }
 0x92b   : > { %v5220_v33 = vpop.eup %5219  ;;  %v6397_v37 = vadd.f32 %v3047_v32, %v6316_v30  ;;  %5243 = vpow2.f32 %v3922_v19 }
 0x92c   : > { %v5222_v35 = vpop.eup %5221  ;;  %3472 = vst [vmem:[%s6361_s28 + $0x40] sm:$0xff] %v5220_v33  ;;  %5245 = vpow2.f32 %v3924_v24  ;;  %v2938_v43 = vpop.f32.mrb[116].mxu0  ;;  %v3036_v33 = vadd.f32 %v6353_v56, %v6312_v25  ;;  %v2925_v56 = vadd.f32 %v6355_v57, %v6314_v29  ;;  %v2929_v57 = vadd.f32 %v6373_v11, %v6310_v28 }
 0x92d   : > { %v5224_v38 = vpop.eup %5223  ;;  %3474 = vst [vmem:[%s6361_s28 + $0x50] sm:$0xff] %v5222_v35  ;;  %5247 = vpow2.f32 %v3923_v34  ;;  %v3051_v26 = vpop.f32.mrb[116].mxu1  ;;  %v6404_v45 = vadd.f32 %v2938_v43, %v6310_v28  ;;  %v3042_v11 = vadd.f32 %v6375_v12, %v6312_v25  ;;  %v3044_v12 = vadd.f32 %v6382_v17, %v6316_v30 }
 0x92e   : > { %v5226_v40 = vpop.eup %5225  ;;  %3473 = vst [vmem:[%s6361_s28 + $0x48] sm:$0xff] %v5224_v38  ;;  %5249 = vpow2.f32 %v3925_v36  ;;  %v6407_v47 = vadd.f32 %v3051_v26, %v6312_v25  ;;  %v2940_v48 = vpop.f32.mrb[117].mxu0 }
 0x92f   : > { %v5228_v42 = vpop.eup %5227  ;;  %3475 = vst [vmem:[%s6361_s28 + $0x58] sm:$0xff] %v5226_v40  ;;  %v3053_v49 = vpop.f32.mrb[117].mxu1  ;;  %5251 = vpow2.f32 %v3926_v39  ;;  %v6410_v54 = vadd.f32 %v2940_v48, %v6314_v29 }
 0x930   : > { %v5230_v44 = vpop.eup %5229  ;;  %3476 = vst [vmem:[%s6361_s28 + $0x60] sm:$0xff] %v5228_v42  ;;  %v6413_v55 = vadd.f32 %v3053_v49, %v6316_v30  ;;  %v2942_v58 = vpop.f32.mrb[118].mxu0  ;;  %5253 = vpow2.f32 %v3928_v41 }
 0x931   : > { %v5232_v52 = vpop.eup %5231  ;;  %v3286_v53 = vadd.f32 1.0, %v5230_v44  ;;  %v3055_v59 = vpop.f32.mrb[118].mxu1  ;;  %v6420_v7 = vadd.f32 %v2942_v58, %v6310_v28  ;;  %v3930_v58 = vmul.f32 -1.442695, %v2923_v23 }
 0x932   : > { %v5234_v60 = vpop.eup %5233  ;;  %v3285_v61 = vadd.f32 1.0, %v5232_v52  ;;  %v2944_v0 = vpop.f32.mrb[119].mxu0  ;;  %v6423_v8 = vadd.f32 %v3055_v59, %v6312_v25  ;;  %v3038_v59 = vadd.f32 %v6358_v62, %v6316_v30 }
 0x933   : > { %v5236_v1 = vpop.eup %5235  ;;  %5255 = vrcp.f32 %v3286_v53  ;;  %v3287_v2 = vadd.f32 1.0, %v5234_v60  ;;  %v3057_v4 = vpop.f32.mrb[119].mxu1  ;;  %v6426_v10 = vadd.f32 %v2944_v0, %v6314_v29 }
 0x934   : > { %v5238_v5 = vpop.eup %5237  ;;  %5257 = vrcp.f32 %v3285_v61  ;;  %v3288_v6 = vadd.f32 1.0, %v5236_v1  ;;  %v6429_v13 = vadd.f32 %v3057_v4, %v6316_v30  ;;  %v2948_v24 = vpop.f32.mrb[120].mxu0 }
 0x935   : > { %v5240_v9 = vpop.eup %5239  ;;  %5259 = vrcp.f32 %v3287_v2  ;;  %v3290_v46 = vadd.f32 1.0, %v5238_v5  ;;  %v6438_v34 = vadd.f32 %v2948_v24, %v6310_v28  ;;  %v3061_v35 = vpop.f32.mrb[120].mxu1  ;;  %v3932_v5 = vmul.f32 -1.442695, %v3036_v33 }
 0x936   : > { %v5242_v50 = vpop.eup %5241  ;;  %5261 = vrcp.f32 %v3288_v6  ;;  %v3289_v14 = vadd.f32 1.0, %v5240_v9  ;;  %v2950_v36 = vpop.f32.mrb[121].mxu0  ;;  %v6441_v40 = vadd.f32 %v3061_v35, %v6312_v25 }
 0x937   : > { %v5244_v18 = vpop.eup %5243  ;;  %5263 = vrcp.f32 %v3290_v46  ;;  %v3291_v19 = vadd.f32 1.0, %v5242_v50  ;;  %v6444_v51 = vadd.f32 %v2950_v36, %v6314_v29  ;;  %v3063_v41 = vpop.f32.mrb[121].mxu1  ;;  %v3931_v46 = vmul.f32 -1.442695, %v2925_v56 }
 0x938   : > { %v5246_v27 = vpop.eup %5245  ;;  %5265 = vrcp.f32 %v3289_v14  ;;  %v3292_v32 = vadd.f32 1.0, %v5244_v18  ;;  %v2952_v42 = vpop.f32.mrb[122].mxu0  ;;  %v6449_v44 = vadd.f32 %v3063_v41, %v6316_v30  ;;  %v3933_v50 = vmul.f32 -1.442695, %v3038_v59 }
 0x939   : > { %v5248_v38 = vpop.eup %5247  ;;  %5267 = vrcp.f32 %v3291_v19  ;;  %v3294_v39 = vadd.f32 1.0, %v5246_v27  ;;  %v3065_v48 = vpop.f32.mrb[122].mxu1  ;;  %v6456_v0 = vadd.f32 %v2952_v42, %v6310_v28  ;;  %v2931_v14 = vadd.f32 %v6380_v16, %v6314_v29 }
 0x93a   : > { %v5250_v43 = vpop.eup %5249  ;;  %5269 = vrcp.f32 %v3292_v32  ;;  %v3293_v26 = vadd.f32 1.0, %v5248_v38  ;;  %v2954_v49 = vpop.f32.mrb[123].mxu0  ;;  %v6459_v3 = vadd.f32 %v3065_v48, %v6312_v25  ;;  %v3934_v16 = vmul.f32 -1.442695, %v2929_v57 }
 0x93b   : > { %v5252_v52 = vpop.eup %5251  ;;  %5271 = vrcp.f32 %v3294_v39  ;;  %v3295_v53 = vadd.f32 1.0, %v5250_v43  ;;  %v3067_v60 = vpop.f32.mrb[123].mxu1  ;;  %v6462_v4 = vadd.f32 %v2954_v49, %v6314_v29  ;;  %v3936_v41 = vmul.f32 -1.442695, %v3042_v11 }
 0x93c   : > { %v5254_v61 = vpop.eup %5253  ;;  %5273 = vrcp.f32 %v3293_v26  ;;  %v3296_v63 = vadd.f32 1.0, %v5252_v52  ;;  %v6468_v6 = vadd.f32 %v3067_v60, %v6316_v30  ;;  %v2958_v18 = vpop.f32.mrb[124].mxu0  ;;  %v2933_v42 = vadd.f32 %v6386_v21, %v6310_v28 }
 0x93d   : > { %v5256_v1 = vpop.eup %5255  ;;  %5275 = vrcp.f32 %v3295_v53  ;;  %v3298_v2 = vadd.f32 1.0, %v5254_v61  ;;  %v3071_v19 = vpop.f32.mrb[124].mxu1  ;;  %v6477_v24 = vadd.f32 %v2958_v18, %v6310_v28  ;;  %v3935_v48 = vmul.f32 -1.442695, %v2931_v14 }
 0x93e   : > { %v5258_v62 = vpop.eup %5257  ;;  %3478 = vst [vmem:[%s6361_s28 + $0x70] sm:$0xff] %v5256_v1  ;;  %5277 = vrcp.f32 %v3296_v63  ;;  %v6480_v27 = vadd.f32 %v3071_v19, %v6312_v25  ;;  %v2960_v32 = vpop.f32.mrb[125].mxu0  ;;  %v3046_v49 = vadd.f32 %v6388_v22, %v6312_v25  ;;  %v3938_v60 = vmul.f32 -1.442695, %v2933_v42 }
 0x93f   : > { %v5260_v9 = vpop.eup %5259  ;;  %3477 = vst [vmem:[%s6361_s28 + $0x68] sm:$0xff] %v5258_v62  ;;  %5279 = vrcp.f32 %v3298_v2  ;;  %v3073_v33 = vpop.f32.mrb[125].mxu1  ;;  %v6485_v36 = vadd.f32 %v2960_v32, %v6314_v29 }
 0x940   : > { %v5262_v23 = vpop.eup %5261  ;;  %3479 = vst [vmem:[%s6361_s28 + $0x78] sm:$0xff] %v5260_v9  ;;  %5281 = vpow2.f32 %v3927_v15  ;;  %v6488_v15 = vadd.f32 %v3073_v33, %v6316_v30  ;;  %v2962_v17 = vpop.f32.mrb[126].mxu0 }
 0x941   : > { %v5264_v35 = vpop.eup %5263  ;;  %3480 = vst [vmem:[%s6361_s28 + $0x80] sm:$0xff] %v5262_v23  ;;  %5283 = vpow2.f32 %v6431_v20  ;;  %v3075_v38 = vpop.f32.mrb[126].mxu1  ;;  %v6494_v43 = vadd.f32 %v2962_v17, %v6310_v28  ;;  %v2935_v28 = vadd.f32 %v6392_v31, %v6314_v29  ;;  %v3940_v31 = vmul.f32 -1.442695, %v3046_v49 }
 0x942   : > { %v5266_v39 = vpop.eup %5265  ;;  %3482 = vst [vmem:[%s6361_s28 + $0x90] sm:$0xff] %v5264_v35  ;;  %5285 = vpow2.f32 %v3930_v58  ;;  %v2964_v20 = vpop.f32.mrb[127].mxu0  ;;  %v6500_v52 = vadd.f32 %v3075_v38, %v6312_v25  ;;  %v3937_v25 = vmul.f32 -1.442695, %v3044_v12 }
 0x943   : > { %v3077_v26 = vpop.f32.mrb[127].mxu1  ;;  %v5268_v56 = vpop.eup %5267  ;;  %3481 = vst [vmem:[%s6361_s28 + $0x88] sm:$0xff] %v5266_v39  ;;  %5287 = vpow2.f32 %v3932_v5  ;;  %v6506_v21 = vadd.f32 %v2964_v20, %v6314_v29  ;;  %v3939_v29 = vmul.f32 -1.442695, %v2935_v28 }
 0x944   : > { %v5270_v53 = vpop.eup %5269  ;;  %3483 = vst [vmem:[%s6361_s28 + $0x98] sm:$0xff] %v5268_v56  ;;  %5289 = vpow2.f32 %v3931_v46  ;;  %v6509_v58 = vadd.f32 %v3077_v26, %v6316_v30  ;;  %v3941_v56 = vmul.f32 -1.442695, %v6397_v37  ;;  %v3945_v37 = vmul.f32 -1.442695, %v6413_v55 }
 0x945   : > { %v5272_v59 = vpop.eup %5271  ;;  %3484 = vst [vmem:[%s6361_s28 + $0xa0] sm:$0xff] %v5270_v53  ;;  %5291 = vpow2.f32 %v3933_v50  ;;  %v3942_v53 = vmul.f32 -1.442695, %v6404_v45  ;;  %v3946_v45 = vmul.f32 -1.442695, %v6420_v7 }
 0x946   : > { %v5274_v22 = vpop.eup %5273  ;;  %3486 = vst [vmem:[%s6361_s28 + $0xb0] sm:$0xff] %v5272_v59  ;;  %5293 = vpow2.f32 %v3934_v16  ;;  %v3944_v59 = vmul.f32 -1.442695, %v6407_v47  ;;  %v3948_v47 = vmul.f32 -1.442695, %v6423_v8 }
 0x947   : > { %v5276_v61 = vpop.eup %5275  ;;  %3485 = vst [vmem:[%s6361_s28 + $0xa8] sm:$0xff] %v5274_v22  ;;  %5295 = vpow2.f32 %v3936_v41  ;;  %v3943_v22 = vmul.f32 -1.442695, %v6410_v54  ;;  %v3947_v54 = vmul.f32 -1.442695, %v6426_v10 }
 0x948   : > { %v5278_v63 = vpop.eup %5277  ;;  %3487 = vst [vmem:[%s6361_s28 + $0xb8] sm:$0xff] %v5276_v61  ;;  %5297 = vpow2.f32 %v3935_v48  ;;  %v3949_v55 = vmul.f32 -1.442695, %v6429_v13  ;;  %v3950_v7 = vmul.f32 -1.442695, %v6438_v34 }
 0x949   : > { %v5280_v30 = vpop.eup %5279  ;;  %3488 = vst [vmem:[%s6361_s28 + $0xc0] sm:$0xff] %v5278_v63  ;;  %5299 = vpow2.f32 %v3937_v25  ;;  %v3952_v8 = vmul.f32 -1.442695, %v6441_v40  ;;  %v3951_v10 = vmul.f32 -1.442695, %v6444_v51 }
 0x94a   : > { %v5282_v57 = vpop.eup %5281  ;;  %3490 = vst [vmem:[%s6361_s28 + $0xd0] sm:$0xff] %v5280_v30  ;;  %5301 = vpow2.f32 %v3938_v60  ;;  %v3953_v13 = vmul.f32 -1.442695, %v6449_v44 }
 0x94b   : > { %v5284_v1 = vpop.eup %5283  ;;  %v3297_v2 = vadd.f32 1.0, %v5282_v57  ;;  %5303 = vpow2.f32 %v3940_v31 }
 0x94c   : > { %v5286_v62 = vpop.eup %5285  ;;  %v3299_v5 = vadd.f32 1.0, %v5284_v1  ;;  %5305 = vpow2.f32 %v3939_v29 }
 0x94d   : > { %v5288_v11 = vpop.eup %5287  ;;  %5307 = vrcp.f32 %v3297_v2  ;;  %v3300_v9 = vadd.f32 1.0, %v5286_v62 }
 0x94e   : > { %v5290_v46 = vpop.eup %5289  ;;  %5309 = vrcp.f32 %v3299_v5  ;;  %v3302_v50 = vadd.f32 1.0, %v5288_v11 }
 0x94f   : > { %v5292_v14 = vpop.eup %5291  ;;  %5311 = vrcp.f32 %v3300_v9  ;;  %v3301_v18 = vadd.f32 1.0, %v5290_v46 }
 0x950   : > { %v5294_v19 = vpop.eup %5293  ;;  %5313 = vrcp.f32 %v3302_v50  ;;  %v3303_v23 = vadd.f32 1.0, %v5292_v14 }
 0x951   : > { %v5296_v12 = vpop.eup %5295  ;;  %5315 = vrcp.f32 %v3301_v18  ;;  %v3304_v32 = vadd.f32 1.0, %v5294_v19 }
 0x952   : > { %v5298_v33 = vpop.eup %5297  ;;  %5317 = vrcp.f32 %v3303_v23  ;;  %v3306_v35 = vadd.f32 1.0, %v5296_v12 }
 0x953   : > { %v5300_v16 = vpop.eup %5299  ;;  %5319 = vrcp.f32 %v3304_v32  ;;  %v3305_v17 = vadd.f32 1.0, %v5298_v33 }
 0x954   : > { %v5302_v38 = vpop.eup %5301  ;;  %5321 = vrcp.f32 %v3306_v35  ;;  %v3307_v39 = vadd.f32 1.0, %v5300_v16 }
 0x955   : > { %v5304_v41 = vpop.eup %5303  ;;  %5323 = vrcp.f32 %v3305_v17  ;;  %v3308_v42 = vadd.f32 1.0, %v5302_v38 }
 0x956   : > { %v5306_v20 = vpop.eup %5305  ;;  %5325 = vrcp.f32 %v3307_v39  ;;  %v3310_v26 = vadd.f32 1.0, %v5304_v41 }
 0x957   : > { %v5308_v48 = vpop.eup %5307  ;;  %5327 = vrcp.f32 %v3308_v42  ;;  %v3309_v49 = vadd.f32 1.0, %v5306_v20 }
 0x958   : > { %v5310_v28 = vpop.eup %5309  ;;  %3489 = vst [vmem:[%s6361_s28 + $0xc8] sm:$0xff] %v5308_v48  ;;  %5329 = vrcp.f32 %v3310_v26 }
 0x959   : > { %v5312_v25 = vpop.eup %5311  ;;  %3491 = vst [vmem:[%s6361_s28 + $0xd8] sm:$0xff] %v5310_v28  ;;  %5331 = vrcp.f32 %v3309_v49 }
 0x95a   : > { %v5314_v60 = vpop.eup %5313  ;;  %3492 = vst [vmem:[%s6361_s28 + $0xe0] sm:$0xff] %v5312_v25  ;;  %5333 = vpow2.f32 %v3941_v56  ;;  %v3954_v56 = vmul.f32 -1.442695, %v6456_v0  ;;  %v3958_v0 = vmul.f32 -1.442695, %v6477_v24 }
 0x95b   : > { %v5316_v61 = vpop.eup %5315  ;;  %3494 = vst [vmem:[%s6361_s28 + $0xf0] sm:$0xff] %v5314_v60  ;;  %5335 = vpow2.f32 %v3942_v53  ;;  %v3956_v53 = vmul.f32 -1.442695, %v6459_v3  ;;  %v3960_v3 = vmul.f32 -1.442695, %v6480_v27 }
 0x95c   : > { %v5318_v31 = vpop.eup %5317  ;;  %3493 = vst [vmem:[%s6361_s28 + $0xe8] sm:$0xff] %v5316_v61  ;;  %5337 = vpow2.f32 %v3944_v59  ;;  %v3955_v59 = vmul.f32 -1.442695, %v6462_v4  ;;  %v3959_v4 = vmul.f32 -1.442695, %v6485_v36 }
 0x95d   : > { %v5320_v63 = vpop.eup %5319  ;;  %3495 = vst [vmem:[%s6361_s28 + $0xf8] sm:$0xff] %v5318_v31  ;;  %5339 = vpow2.f32 %v3943_v22  ;;  %v3957_v22 = vmul.f32 -1.442695, %v6468_v6  ;;  %v3961_v6 = vmul.f32 -1.442695, %v6488_v15 }
 0x95e   : > { %v5322_v29 = vpop.eup %5321  ;;  %3496 = vst [vmem:[%s6361_s28 + $0x100] sm:$0xff] %v5320_v63  ;;  %5341 = vpow2.f32 %v3945_v37  ;;  %v3962_v24 = vmul.f32 -1.442695, %v6494_v43  ;;  %v3964_v27 = vmul.f32 -1.442695, %v6500_v52 }
 0x95f   : > { %v5324_v30 = vpop.eup %5323  ;;  %3498 = vst [vmem:[%s6361_s28 + $0x110] sm:$0xff] %v5322_v29  ;;  %5343 = vpow2.f32 %v3946_v45  ;;  %v3963_v63 = vmul.f32 -1.442695, %v6506_v21  ;;  %v3965_v15 = vmul.f32 -1.442695, %v6509_v58 }
 0x960   : > { %v5326_v57 = vpop.eup %5325  ;;  %3497 = vst [vmem:[%s6361_s28 + $0x108] sm:$0xff] %v5324_v30  ;;  %5345 = vpow2.f32 %v3948_v47 }
 0x961   : > { %v5328_v1 = vpop.eup %5327  ;;  %3499 = vst [vmem:[%s6361_s28 + $0x118] sm:$0xff] %v5326_v57  ;;  %5347 = vpow2.f32 %v3947_v54 }
 0x962   : > { %v5330_v2 = vpop.eup %5329  ;;  %3500 = vst [vmem:[%s6361_s28 + $0x120] sm:$0xff] %v5328_v1  ;;  %5349 = vpow2.f32 %v3949_v55 }
 0x963   : > { %v5332_v62 = vpop.eup %5331  ;;  %3502 = vst [vmem:[%s6361_s28 + $0x130] sm:$0xff] %v5330_v2  ;;  %5351 = vpow2.f32 %v3950_v7 }
 0x964   : > { %v5334_v34 = vpop.eup %5333  ;;  %3501 = vst [vmem:[%s6361_s28 + $0x128] sm:$0xff] %v5332_v62  ;;  %5353 = vpow2.f32 %v3952_v8 }
 0x965   : > { %v5336_v5 = vpop.eup %5335  ;;  %v3311_v11 = vadd.f32 1.0, %v5334_v34  ;;  %5355 = vpow2.f32 %v3951_v10 }
 0x966   : > { %v5338_v40 = vpop.eup %5337  ;;  %v3312_v9 = vadd.f32 1.0, %v5336_v5  ;;  %5357 = vpow2.f32 %v3953_v13 }
 0x967   : > { %v5340_v46 = vpop.eup %5339  ;;  %5359 = vrcp.f32 %v3311_v11  ;;  %v3314_v51 = vadd.f32 1.0, %v5338_v40 }
 0x968   : > { %v5342_v50 = vpop.eup %5341  ;;  %5361 = vrcp.f32 %v3312_v9  ;;  %v3313_v14 = vadd.f32 1.0, %v5340_v46 }
 0x969   : > { %v5344_v18 = vpop.eup %5343  ;;  %5363 = vrcp.f32 %v3314_v51  ;;  %v3315_v44 = vadd.f32 1.0, %v5342_v50 }
 0x96a   : > { %v5346_v19 = vpop.eup %5345  ;;  %5365 = vrcp.f32 %v3313_v14  ;;  %v3316_v23 = vadd.f32 1.0, %v5344_v18 }
 0x96b   : > { %v5348_v12 = vpop.eup %5347  ;;  %5367 = vrcp.f32 %v3315_v44  ;;  %v3318_v32 = vadd.f32 1.0, %v5346_v19 }
 0x96c   : > { %v5350_v33 = vpop.eup %5349  ;;  %5369 = vrcp.f32 %v3316_v23  ;;  %v3317_v35 = vadd.f32 1.0, %v5348_v12 }
 0x96d   : > { %v5352_v16 = vpop.eup %5351  ;;  %5371 = vrcp.f32 %v3318_v32  ;;  %v3319_v17 = vadd.f32 1.0, %v5350_v33 }
 0x96e   : > { %v5354_v38 = vpop.eup %5353  ;;  %5373 = vrcp.f32 %v3317_v35  ;;  %v3320_v39 = vadd.f32 1.0, %v5352_v16 }
 0x96f   : > { %v5356_v41 = vpop.eup %5355  ;;  %5375 = vrcp.f32 %v3319_v17  ;;  %v3322_v42 = vadd.f32 1.0, %v5354_v38 }
 0x970   : > { %v5358_v20 = vpop.eup %5357  ;;  %5377 = vrcp.f32 %v3320_v39  ;;  %v3321_v26 = vadd.f32 1.0, %v5356_v41 }
 0x971   : > { %v5360_v48 = vpop.eup %5359  ;;  %5379 = vrcp.f32 %v3322_v42  ;;  %v3323_v49 = vadd.f32 1.0, %v5358_v20 }
 0x972   : > { %v5362_v28 = vpop.eup %5361  ;;  %3503 = vst [vmem:[%s6361_s28 + $0x138] sm:$0xff] %v5360_v48  ;;  %5381 = vrcp.f32 %v3321_v26 }
 0x973   : > { %v5364_v25 = vpop.eup %5363  ;;  %3504 = vst [vmem:[%s6361_s28 + $0x140] sm:$0xff] %v5362_v28  ;;  %5383 = vrcp.f32 %v3323_v49 }
 0x974   : > { %v5366_v60 = vpop.eup %5365  ;;  %3506 = vst [vmem:[%s6361_s28 + $0x150] sm:$0xff] %v5364_v25  ;;  %5385 = vpow2.f32 %v3954_v56 }
 0x975   : > { %v5368_v37 = vpop.eup %5367  ;;  %3505 = vst [vmem:[%s6361_s28 + $0x148] sm:$0xff] %v5366_v60  ;;  %5387 = vpow2.f32 %v3956_v53 }
 0x976   : > { %v5370_v61 = vpop.eup %5369  ;;  %3507 = vst [vmem:[%s6361_s28 + $0x158] sm:$0xff] %v5368_v37  ;;  %5389 = vpow2.f32 %v3955_v59 }
 0x977   : > { %v5372_v45 = vpop.eup %5371  ;;  %3508 = vst [vmem:[%s6361_s28 + $0x160] sm:$0xff] %v5370_v61  ;;  %5391 = vpow2.f32 %v3957_v22 }
 0x978   : > { %v5374_v31 = vpop.eup %5373  ;;  %3510 = vst [vmem:[%s6361_s28 + $0x170] sm:$0xff] %v5372_v45  ;;  %5393 = vpow2.f32 %v3958_v0 }
 0x979   : > { %v5376_v47 = vpop.eup %5375  ;;  %3509 = vst [vmem:[%s6361_s28 + $0x168] sm:$0xff] %v5374_v31  ;;  %5395 = vpow2.f32 %v3960_v3 }
 0x97a   : > { %v5378_v36 = vpop.eup %5377  ;;  %3511 = vst [vmem:[%s6361_s28 + $0x178] sm:$0xff] %v5376_v47  ;;  %5397 = vpow2.f32 %v3959_v4 }
 0x97b   : > { %v5380_v54 = vpop.eup %5379  ;;  %3512 = vst [vmem:[%s6361_s28 + $0x180] sm:$0xff] %v5378_v36  ;;  %5399 = vpow2.f32 %v3961_v6 }
 0x97c   : > { %v5382_v29 = vpop.eup %5381  ;;  %3514 = vst [vmem:[%s6361_s28 + $0x190] sm:$0xff] %v5380_v54  ;;  %5401 = vpow2.f32 %v3962_v24 }
 0x97d   : > { %v5384_v43 = vpop.eup %5383  ;;  %3513 = vst [vmem:[%s6361_s28 + $0x188] sm:$0xff] %v5382_v29  ;;  %5403 = vpow2.f32 %v3964_v27 }
 0x97e   : > { %v5386_v55 = vpop.eup %5385  ;;  %3515 = vst [vmem:[%s6361_s28 + $0x198] sm:$0xff] %v5384_v43  ;;  %5405 = vpow2.f32 %v3963_v63 }
 0x97f   : > { %v5388_v52 = vpop.eup %5387  ;;  %v3324_v30 = vadd.f32 1.0, %v5386_v55  ;;  %5407 = vpow2.f32 %v3965_v15 }
 0x980   : > { %v5390_v7 = vpop.eup %5389  ;;  %v3326_v57 = vadd.f32 1.0, %v5388_v52 }
 0x981   : > { %v5392_v21 = vpop.eup %5391  ;;  %5409 = vrcp.f32 %v3324_v30  ;;  %v3325_v8 = vadd.f32 1.0, %v5390_v7 }
 0x982   : > { %v5394_v1 = vpop.eup %5393  ;;  %5411 = vrcp.f32 %v3326_v57  ;;  %v3327_v58 = vadd.f32 1.0, %v5392_v21 }
 0x983   : > { %v5396_v10 = vpop.eup %5395  ;;  %5413 = vrcp.f32 %v3325_v8  ;;  %v3328_v2 = vadd.f32 1.0, %v5394_v1 }
 0x984   : > { %v5398_v13 = vpop.eup %5397  ;;  %5415 = vrcp.f32 %v3327_v58  ;;  %v3330_v62 = vadd.f32 1.0, %v5396_v10 }
 0x985   : > { %v5400_v34 = vpop.eup %5399  ;;  %5417 = vrcp.f32 %v3328_v2  ;;  %v3329_v5 = vadd.f32 1.0, %v5398_v13 }
 0x986   : > { %v5402_v11 = vpop.eup %5401  ;;  %5419 = vrcp.f32 %v3330_v62  ;;  %v3331_v40 = vadd.f32 1.0, %v5400_v34 }
 0x987   : > { %v5404_v9 = vpop.eup %5403  ;;  %5421 = vrcp.f32 %v3329_v5  ;;  %v3332_v46 = vadd.f32 1.0, %v5402_v11 }
 0x988   : > { %v5406_v51 = vpop.eup %5405  ;;  %5423 = vrcp.f32 %v3331_v40  ;;  %v3334_v50 = vadd.f32 1.0, %v5404_v9 }
 0x989   : > { %v5408_v14 = vpop.eup %5407  ;;  %5425 = vrcp.f32 %v3332_v46  ;;  %v3333_v18 = vadd.f32 1.0, %v5406_v51 }
 0x98a   : > { %5427 = vrcp.f32 %v3334_v50  ;;  %v3335_v44 = vadd.f32 1.0, %v5408_v14 }
 0x98b   : > { %v5410_v19 = vpop.eup %5409  ;;  %5429 = vrcp.f32 %v3333_v18 }
 0x98c   : > { %v5412_v23 = vpop.eup %5411  ;;  %3516 = vst [vmem:[%s6361_s28 + $0x1a0] sm:$0xff] %v5410_v19  ;;  %5431 = vrcp.f32 %v3335_v44 }
 0x98d   : > { %v5414_v12 = vpop.eup %5413  ;;  %3518 = vst [vmem:[%s6361_s28 + $0x1b0] sm:$0xff] %v5412_v23 }
 0x98e   : > { %v5416_v32 = vpop.eup %5415  ;;  %3517 = vst [vmem:[%s6361_s28 + $0x1a8] sm:$0xff] %v5414_v12 }
 0x98f   : > { %v5418_v33 = vpop.eup %5417  ;;  %3519 = vst [vmem:[%s6361_s28 + $0x1b8] sm:$0xff] %v5416_v32 }
 0x990   : > { %v5420_v35 = vpop.eup %5419  ;;  %3520 = vst [vmem:[%s6361_s28 + $0x1c0] sm:$0xff] %v5418_v33 }
 0x991   : > { %v5422_v16 = vpop.eup %5421  ;;  %3522 = vst [vmem:[%s6361_s28 + $0x1d0] sm:$0xff] %v5420_v35 }
 0x992   : > { %v5424_v17 = vpop.eup %5423  ;;  %3521 = vst [vmem:[%s6361_s28 + $0x1c8] sm:$0xff] %v5422_v16 }
 0x993   : > { %v5426_v38 = vpop.eup %5425  ;;  %3523 = vst [vmem:[%s6361_s28 + $0x1d8] sm:$0xff] %v5424_v17 }
 0x994   : > { %v5428_v39 = vpop.eup %5427  ;;  %3524 = vst [vmem:[%s6361_s28 + $0x1e0] sm:$0xff] %v5426_v38 }
 0x995   : > { %v5430_v41 = vpop.eup %5429  ;;  %3526 = vst [vmem:[%s6361_s28 + $0x1f0] sm:$0xff] %v5428_v39 }
 0x996   : > { %v5432_v42 = vpop.eup %5431  ;;  %3525 = vst [vmem:[%s6361_s28 + $0x1e8] sm:$0xff] %v5430_v41 }
 0x997   : > { %3527 = vst [vmem:[%s6361_s28 + $0x1f8] sm:$0xff] %v5432_v42 }
 0x998   : > { %5446 = shalt.err (!%p5443_p3)
}
 0x999   : > { %s5447_s17 = scalar_lea.hbm %s6582_s12, 8192  ;;  %s5451_s20 = scalar_lea.hbm %s6638_s6, 16384 }
 0x99a   : > { %p5448_p4 = scmp.ne.s32.totalorder %s6582_s12, %s5447_s17  ;;  %p5452_p9 = scmp.lt.u32.totalorder %s6582_s12, %s6638_s6 }
 0x99b   : > { %p5453_p10 = scmp.lt.u32.totalorder %s5451_s20, %s5447_s17  ;;  %p5455_p12 = scmp.lt.u32.totalorder %s5447_s17, %s6582_s12 }
 0x99c   : > { %p5449_p7 = pnand %p5448_p4, %p5574_p5 }
 0x99d   : > { %p5454_p11 = por %p5453_p10, %p5452_p9 }
 0x99e   : > { %p5450_p8 = pneg %p5449_p7 }
 0x99f   : > { %p5456_p13 = por %p5455_p12, %p5454_p11 }
 0x9a1   : > { %p5457_p0 = pnand %p5456_p13, %p5450_p8 }
 0x9a3   : > { %5460 = shalt.err (!%p5457_p0)
}
 0x9a4   : > { %s5499_s29 = smov 512   ;;  %s5500_s15 = smov 32  }
 0x9a5   : > { %4743 = dma.vmem_to_hbm [thread:$0]  (%p5574_p5), %s6584_s9, 8192, %s6582_s12, %s6591_s25, %s5499_s29, %s5499_s29, %s5500_s15  }
 0x9a6 PF: > { %p4749_p1 = scmp.ge.s32.totalorder %s5495_s24, 2  ;;  %s3558_s10 = sand.u32 1, %s5483_s21  }
 0x9a7   : > { %s3559_s13 = scalar_lea.sflag [#allocation3], %s3558_s10 }
 0x9a8   : > { %p4746_p2 = pnand %p4749_p1, %p5578_p6 }
 0x9aa   : > { %5478 = dma.done.wait (!%p4746_p2), %s3559_s13, 8192  }
 0x9ab   : > { %5480 = vsyncadd (!%p4746_p2), %s3559_s13, 4294959104  ;;  %p16_p3 = scmp.ge.s32.totalorder %s5561_s27, 4   ;;  %s6641_s21 = smov %s5487_s22 }
 0x9ac   : > { %s6642_s22 = smov %s5491_s23  ;;  %s6643_s23 = smov %s5572_s30 }
 0x9ad   : > { %s6644_s24 = smov %s5561_s27  ;;  %18 = sbr.rel (!%p16_p3) target bundleno = 3 (0x3), region = 86 }
 0x9b4   :  { %3564 = vsyncpa [#allocation3], 1 }
 0x9b5   :  { %3566 = vsyncpa [#allocation3 + $0x1], 1 }

</bundles_post_ra>
